<compile_context>
chip_gen: v7x
topology: tpu7x:2x2x1
jax: 0.10.0
libtpu: 0.0.40
codegen_flags: <defaults>
</compile_context>

<pallas_src>
import math
import jax
import jax.numpy as jnp
from jax.experimental import pallas as pl
from jax.experimental.pallas import tpu as pltpu

# ---------------- model config (small, synthetic) ----------------
B = 2          # batch
S = 8          # sequence length
H = 32         # hidden size
NH = 4         # attention heads
DH = H // NH   # head dim
HALF = DH // 2
FFN = 64       # MLP intermediate size
V = 128        # vocab size
L = 2          # decoder layers
EPS = 1e-6
BS = B * S
WSLAB = 5 * H + H + 2 * FFN          # 320 : [wqkv_ext | wo | wg|wu]


# ---------------- fused whole-model Pallas kernel ----------------
def _fused_llm_kernel(act_ref, w_ref, wd_ref, norm_ref,
                      feat_ref, logits_ref, attn_sc):
    """Single invocation = full L-layer decoder forward for all B*S rows."""
    act = act_ref[...]                            # (BS, 3H + BS) f32
    x    = act[:, 0 * H:1 * H]                    # embeddings        (BS, H)
    cosT = act[:, 1 * H:2 * H]                    # RoPE cos (tiled)  (BS, H)
    sinT = act[:, 2 * H:3 * H]                    # RoPE sin (tiled)  (BS, H)
    bias = act[:, 3 * H:3 * H + BS]               # additive bias     (BS, BS)
    norms = norm_ref[...]                         # (2L+1, H) f32

    scale = 1.0 / math.sqrt(DH)

    def rms(v, w_row):                            # v: (BS, X) f32, w_row: (1, X)
        var = jnp.mean(v * v, axis=-1, keepdims=True)
        return v * jax.lax.rsqrt(var + EPS) * w_row

    hidden = x
    for li in range(L):                           # static unroll over layers
        w_l = w_ref[li]                           # (H, 320) bf16

        # ---------- self-attention block ----------
        hn = rms(hidden, norms[2 * li:2 * li + 1, :]).astype(jnp.bfloat16)
        qkvr = jnp.dot(hn, w_l[:, :5 * H],
                       preferred_element_type=jnp.float32)       # (BS, 5H)
        # RoPE as two full-width FMAs (rotate-half baked into the weights).
        q = (qkvr[:, 0 * H:1 * H] * cosT
             + qkvr[:, 3 * H:4 * H] * sinT).astype(jnp.bfloat16)
        k = (qkvr[:, 1 * H:2 * H] * cosT
             + qkvr[:, 4 * H:5 * H] * sinT).astype(jnp.bfloat16)
        v = qkvr[:, 2 * H:3 * H].astype(jnp.bfloat16)

        for h in range(NH):                       # static unroll over heads
            qh = q[:, h * DH:(h + 1) * DH]
            kh = k[:, h * DH:(h + 1) * DH]
            vh = v[:, h * DH:(h + 1) * DH]
            # q @ k^T without an explicit transpose: contract dim 1 with dim 1.
            s = jax.lax.dot_general(
                qh, kh, (((1,), (1,)), ((), ())),
                preferred_element_type=jnp.float32) * scale + bias
            m = jnp.max(s, axis=-1, keepdims=True)
            p = jnp.exp(s - m)
            denom = jnp.sum(p, axis=-1, keepdims=True)
            probs = (p / denom).astype(jnp.bfloat16)              # exact divide
            attn_sc[:, h * DH:(h + 1) * DH] = jnp.dot(
                probs, vh, preferred_element_type=jnp.float32)
        attn = attn_sc[...].astype(jnp.bfloat16)                  # (BS, H)
        hidden = hidden + jnp.dot(attn, w_l[:, 5 * H:6 * H],
                                  preferred_element_type=jnp.float32)

        # ---------- SwiGLU MLP block ----------
        hn = rms(hidden, norms[2 * li + 1:2 * li + 2, :]).astype(jnp.bfloat16)
        gu = jnp.dot(hn, w_l[:, 6 * H:6 * H + 2 * FFN],
                     preferred_element_type=jnp.float32)          # (BS, 2F)
        g = gu[:, :FFN]
        u = gu[:, FFN:]
        act_mlp = ((g * jax.nn.sigmoid(g)) * u).astype(jnp.bfloat16)
        hidden = hidden + jnp.dot(act_mlp, wd_ref[li],
                                  preferred_element_type=jnp.float32)

    features = rms(hidden, norms[2 * L:2 * L + 1, :])             # (BS, H)
    feat_ref[...] = features.astype(feat_ref.dtype)
    logits_ref[...] = jnp.dot(features.astype(jnp.bfloat16),
                              w_ref[L][:, :V],
                              preferred_element_type=jnp.float32
                              ).astype(logits_ref.dtype)


# ---------------- params ----------------
def init_params(key):
    def dense(k, shape, scale=0.02):
        return scale * jax.random.normal(k, shape, dtype=jnp.float32)

    keys = jax.random.split(key, 1 + L)
    layers = []
    for li in range(L):
        ks = jax.random.split(keys[li], 8)
        layers.append(dict(
            attn_norm=jnp.ones((H,), jnp.float32),
            wq=dense(ks[0], (H, H)),
            wk=dense(ks[1], (H, H)),
            wv=dense(ks[2], (H, H)),
            wo=dense(ks[3], (H, H)),
            mlp_norm=jnp.ones((H,), jnp.float32),
            wg=dense(ks[4], (H, FFN)),
            wu=dense(ks[5], (H, FFN)),
            wd=dense(ks[6], (FFN, H)),
        ))
    lm_head = dense(keys[L], (H, V))
    return dict(layers=layers, final_norm=jnp.ones((H,), jnp.float32),
                lm_head=lm_head)


def _rotate_half_cols(w):
    """Return W_rot such that x @ W_rot == rotate_half_per_head(x @ W)."""
    w3 = w.reshape(H, NH, DH)
    w3 = jnp.concatenate([-w3[:, :, HALF:], w3[:, :, :HALF]], axis=-1)
    return w3.reshape(H, H)


def _pack_params(params):
    """Pack all weights into 3 slabs; fuse QKV(+rotated) / gate-up; cast to bf16."""
    layers = params["layers"]
    w_rows = []
    for lyr in layers:
        wqkv_ext = jnp.concatenate(
            [lyr["wq"], lyr["wk"], lyr["wv"],
             _rotate_half_cols(lyr["wq"]), _rotate_half_cols(lyr["wk"])], axis=1)
        wgu = jnp.concatenate([lyr["wg"], lyr["wu"]], axis=1)
        w_rows.append(jnp.concatenate([wqkv_ext, lyr["wo"], wgu], axis=1))  # (H,320)
    lm_head_pad = jnp.pad(params["lm_head"], ((0, 0), (0, WSLAB - V)))      # (H,320)
    w_slab = jnp.stack(w_rows + [lm_head_pad]).astype(jnp.bfloat16)   # (L+1,H,320)
    wd_slab = jnp.stack([lyr["wd"] for lyr in layers]).astype(jnp.bfloat16)  # (L,F,H)
    norm_rows = []
    for lyr in layers:
        norm_rows += [lyr["attn_norm"], lyr["mlp_norm"]]
    norm_rows.append(params["final_norm"])
    norms = jnp.stack(norm_rows).astype(jnp.float32)                  # (2L+1, H)
    return w_slab, wd_slab, norms


# ---------------- forward (mirrors LLM.forward: returns (features, logits)) ----------------
def llm_forward(params, embeddings, attention_mask=None, position_ids=None):
    b, s, h = embeddings.shape
    assert (b, s, h) == (B, S, H)
    if attention_mask is None:
        attention_mask = jnp.ones((b, s), jnp.float32)
    if position_ids is None:
        position_ids = jnp.broadcast_to(jnp.arange(s, dtype=jnp.int32), (b, s))

    # RoPE tables, tiled across heads to full hidden width (applied in-kernel).
    inv_freq = 1.0 / (10000.0 ** (jnp.arange(HALF, dtype=jnp.float32) / HALF))
    freqs = position_ids.astype(jnp.float32)[..., None] * inv_freq          # (B,S,HALF)
    cos = jnp.concatenate([jnp.cos(freqs), jnp.cos(freqs)], axis=-1)        # (B,S,DH)
    sin = jnp.concatenate([jnp.sin(freqs), jnp.sin(freqs)], axis=-1)
    cosT = jnp.tile(cos, (1, 1, NH)).reshape(b * s, H)                      # (BS,H)
    sinT = jnp.tile(sin, (1, 1, NH)).reshape(b * s, H)

    # Block-diagonal (per-batch) causal + key-padding additive bias.
    idx = jnp.arange(b * s, dtype=jnp.int32)
    row, col = idx[:, None], idx[None, :]
    same_batch = (row // s) == (col // s)
    causal = (col % s) <= (row % s)
    key_ok = attention_mask.reshape(1, b * s).astype(jnp.float32) > 0.0
    allowed = same_batch & causal & key_ok
    bias = jnp.where(allowed, 0.0, -1e9).astype(jnp.float32)                # (BS,BS)

    act_in = jnp.concatenate(
        [embeddings.reshape(b * s, h).astype(jnp.float32), cosT, sinT, bias],
        axis=-1)                                                            # (BS,3H+BS)

    w_slab, wd_slab, norms = _pack_params(params)

    feat2d, logits2d = pl.pallas_call(
        _fused_llm_kernel,
        out_shape=(jax.ShapeDtypeStruct((b * s, H), jnp.float32),
                   jax.ShapeDtypeStruct((b * s, V), jnp.float32)),
        grid=(1,),
        in_specs=[
            pl.BlockSpec((b * s, 3 * H + b * s), lambda i: (0, 0)),   # act slab
            pl.BlockSpec((L + 1, H, WSLAB), lambda i: (0, 0, 0)),     # weight slab
            pl.BlockSpec((L, FFN, H), lambda i: (0, 0, 0)),           # Wd slab
            pl.BlockSpec((2 * L + 1, H), lambda i: (0, 0)),           # norms
        ],
        out_specs=(
            pl.BlockSpec((b * s, H), lambda i: (0, 0)),               # features
            pl.BlockSpec((b * s, V), lambda i: (0, 0)),               # logits (lane-dense)
        ),
        scratch_shapes=[pltpu.VMEM((b * s, H), jnp.float32)],         # head-output accum
        compiler_params=pltpu.CompilerParams(dimension_semantics=("arbitrary",)),
    )(act_in, w_slab, wd_slab, norms)

    return feat2d.reshape(b, s, H), logits2d.reshape(b, s, V)
    # TODO(synk): greedy_sample / sample_categorical (top-k/top-p multinomial
    # autoregressive decode loop) is host-side control flow, not a kernel.


if __name__ == "__main__":
    key = jax.random.PRNGKey(0)
    pkey, ekey = jax.random.split(key)
    params = init_params(pkey)

    embeddings = jax.random.normal(ekey, (B, S, H), dtype=jnp.float32)
    attention_mask = jnp.ones((B, S), dtype=jnp.float32)
    position_ids = jnp.broadcast_to(jnp.arange(S, dtype=jnp.int32), (B, S))

    features, logits = llm_forward(params, embeddings, attention_mask,
                                   position_ids)
    jax.block_until_ready((features, logits))

    assert features.shape == (B, S, H)
    assert logits.shape == (B, S, V)
    assert bool(jnp.all(jnp.isfinite(features))) and bool(jnp.all(jnp.isfinite(logits)))
    print("KERNEL_OK")
</pallas_src>

<mosaic_0001>
module attributes {stable_mosaic.version = 11 : i64} {
  func.func @_fused_llm_kernel(%arg0: i32, %arg1: memref<16x112xf32, #tpu.memory_space<vmem>>, %arg2: memref<3x32x320xbf16, #tpu.memory_space<vmem>>, %arg3: memref<2x64x32xbf16, #tpu.memory_space<vmem>>, %arg4: memref<5x32xf32, #tpu.memory_space<vmem>>, %arg5: memref<16x32xf32, #tpu.memory_space<vmem>>, %arg6: memref<16x128xf32, #tpu.memory_space<vmem>>, %arg7: memref<16x32xf32, #tpu.memory_space<vmem>>) attributes {dimension_semantics = [#tpu.dimension_semantics<arbitrary>], iteration_bounds = array<i64: 1>, scalar_prefetch = 0 : i64, scratch_operands = 1 : i64, tpu.core_type = #tpu.core_type<tc>, window_params = [{pipeline_mode = #tpu.pipeline_mode<synchronous>, transform_indices = @transform_0, window_bounds = array<i64: 16, 112>}, {pipeline_mode = #tpu.pipeline_mode<synchronous>, transform_indices = @transform_1, window_bounds = array<i64: 3, 32, 320>}, {pipeline_mode = #tpu.pipeline_mode<synchronous>, transform_indices = @transform_2, window_bounds = array<i64: 2, 64, 32>}, {pipeline_mode = #tpu.pipeline_mode<synchronous>, transform_indices = @transform_3, window_bounds = array<i64: 5, 32>}, {pipeline_mode = #tpu.pipeline_mode<synchronous>, transform_indices = @transform_4, window_bounds = array<i64: 16, 32>}, {pipeline_mode = #tpu.pipeline_mode<synchronous>, transform_indices = @transform_5, window_bounds = array<i64: 16, 128>}]} {
    %c0 = arith.constant 0 : index
    %c0_0 = arith.constant 0 : index
    %0 = vector.load %arg1[%c0, %c0_0] : memref<16x112xf32, #tpu.memory_space<vmem>>, vector<16x112xf32>
    %1 = vector.extract_strided_slice %0 {offsets = [0, 0], sizes = [16, 32], strides = [1, 1]} : vector<16x112xf32> to vector<16x32xf32>
    %2 = vector.extract_strided_slice %0 {offsets = [0, 32], sizes = [16, 32], strides = [1, 1]} : vector<16x112xf32> to vector<16x32xf32>
    %3 = vector.extract_strided_slice %0 {offsets = [0, 64], sizes = [16, 32], strides = [1, 1]} : vector<16x112xf32> to vector<16x32xf32>
    %4 = vector.extract_strided_slice %0 {offsets = [0, 96], sizes = [16, 16], strides = [1, 1]} : vector<16x112xf32> to vector<16x16xf32>
    %c0_1 = arith.constant 0 : index
    %c0_2 = arith.constant 0 : index
    %5 = vector.load %arg4[%c0_1, %c0_2] : memref<5x32xf32, #tpu.memory_space<vmem>>, vector<5x32xf32>
    %c0_3 = arith.constant 0 : index
    %c0_4 = arith.constant 0 : index
    %c0_5 = arith.constant 0 : index
    %6 = vector.load %arg2[%c0_3, %c0_4, %c0_5] : memref<3x32x320xbf16, #tpu.memory_space<vmem>>, vector<1x32x320xbf16>
    %7 = vector.shape_cast %6 : vector<1x32x320xbf16> to vector<32x320xbf16>
    %8 = vector.extract_strided_slice %5 {offsets = [0, 0], sizes = [1, 32], strides = [1, 1]} : vector<5x32xf32> to vector<1x32xf32>
    %9 = arith.mulf %1, %1 : vector<16x32xf32>
    %cst = arith.constant dense<0.000000e+00> : vector<16xf32>
    %10 = vector.multi_reduction <add>, %9, %cst [1] : vector<16x32xf32> to vector<16xf32>
    %11 = vector.shape_cast %10 : vector<16xf32> to vector<16x1xf32>
    %cst_6 = arith.constant 3.200000e+01 : f32
    %12 = vector.broadcast %cst_6 : f32 to vector<16x1xf32>
    %13 = arith.divf %11, %12 : vector<16x1xf32>
    %cst_7 = arith.constant 9.99999997E-7 : f32
    %14 = vector.broadcast %cst_7 : f32 to vector<16x1xf32>
    %15 = arith.addf %13, %14 : vector<16x1xf32>
    %16 = math.rsqrt %15 : vector<16x1xf32>
    %17 = vector.broadcast %16 : vector<16x1xf32> to vector<16x32xf32>
    %18 = arith.mulf %1, %17 : vector<16x32xf32>
    %19 = vector.broadcast %8 : vector<1x32xf32> to vector<16x32xf32>
    %20 = arith.mulf %18, %19 : vector<16x32xf32>
    %21 = arith.truncf %20 : vector<16x32xf32> to vector<16x32xbf16>
    %22 = vector.extract_strided_slice %7 {offsets = [0, 0], sizes = [32, 160], strides = [1, 1]} : vector<32x320xbf16> to vector<32x160xbf16>
    %cst_8 = arith.constant dense<0.000000e+00> : vector<16x160xf32>
    %23 = tpu.matmul %21, %22, %cst_8 {dimension_numbers = #tpu.dot_dimension_numbers<[1], [0], [0], [1], [0, 0, 1, 1], [], []>} : vector<16x32xbf16>, vector<32x160xbf16>, vector<16x160xf32> -> vector<16x160xf32>
    %24 = vector.extract_strided_slice %23 {offsets = [0, 0], sizes = [16, 32], strides = [1, 1]} : vector<16x160xf32> to vector<16x32xf32>
    %25 = arith.mulf %24, %2 : vector<16x32xf32>
    %26 = vector.extract_strided_slice %23 {offsets = [0, 96], sizes = [16, 32], strides = [1, 1]} : vector<16x160xf32> to vector<16x32xf32>
    %27 = arith.mulf %26, %3 : vector<16x32xf32>
    %28 = arith.addf %25, %27 : vector<16x32xf32>
    %29 = arith.truncf %28 : vector<16x32xf32> to vector<16x32xbf16>
    %30 = vector.extract_strided_slice %23 {offsets = [0, 32], sizes = [16, 32], strides = [1, 1]} : vector<16x160xf32> to vector<16x32xf32>
    %31 = arith.mulf %30, %2 : vector<16x32xf32>
    %32 = vector.extract_strided_slice %23 {offsets = [0, 128], sizes = [16, 32], strides = [1, 1]} : vector<16x160xf32> to vector<16x32xf32>
    %33 = arith.mulf %32, %3 : vector<16x32xf32>
    %34 = arith.addf %31, %33 : vector<16x32xf32>
    %35 = arith.truncf %34 : vector<16x32xf32> to vector<16x32xbf16>
    %36 = vector.extract_strided_slice %23 {offsets = [0, 64], sizes = [16, 32], strides = [1, 1]} : vector<16x160xf32> to vector<16x32xf32>
    %37 = arith.truncf %36 : vector<16x32xf32> to vector<16x32xbf16>
    %38 = vector.extract_strided_slice %29 {offsets = [0, 0], sizes = [16, 8], strides = [1, 1]} : vector<16x32xbf16> to vector<16x8xbf16>
    %39 = vector.extract_strided_slice %35 {offsets = [0, 0], sizes = [16, 8], strides = [1, 1]} : vector<16x32xbf16> to vector<16x8xbf16>
    %40 = vector.extract_strided_slice %37 {offsets = [0, 0], sizes = [16, 8], strides = [1, 1]} : vector<16x32xbf16> to vector<16x8xbf16>
    %cst_9 = arith.constant dense<0.000000e+00> : vector<16x16xf32>
    %41 = tpu.matmul %38, %39, %cst_9 {dimension_numbers = #tpu.dot_dimension_numbers<[1], [1], [0], [0], [0, 0, 1, 0], [], []>} : vector<16x8xbf16>, vector<16x8xbf16>, vector<16x16xf32> -> vector<16x16xf32>
    %cst_10 = arith.constant 0.353553385 : f32
    %42 = vector.broadcast %cst_10 : f32 to vector<16x16xf32>
    %43 = arith.mulf %41, %42 : vector<16x16xf32>
    %44 = arith.addf %43, %4 : vector<16x16xf32>
    %cst_11 = arith.constant dense<0xFF800000> : vector<16xf32>
    %45 = vector.multi_reduction <maximumf>, %44, %cst_11 [1] : vector<16x16xf32> to vector<16xf32>
    %46 = vector.shape_cast %45 : vector<16xf32> to vector<16x1xf32>
    %47 = vector.broadcast %46 : vector<16x1xf32> to vector<16x16xf32>
    %48 = arith.subf %44, %47 : vector<16x16xf32>
    %49 = math.exp %48 : vector<16x16xf32>
    %cst_12 = arith.constant dense<0.000000e+00> : vector<16xf32>
    %50 = vector.multi_reduction <add>, %49, %cst_12 [1] : vector<16x16xf32> to vector<16xf32>
    %51 = vector.shape_cast %50 : vector<16xf32> to vector<16x1xf32>
    %52 = vector.broadcast %51 : vector<16x1xf32> to vector<16x16xf32>
    %53 = arith.divf %49, %52 : vector<16x16xf32>
    %54 = arith.truncf %53 : vector<16x16xf32> to vector<16x16xbf16>
    %cst_13 = arith.constant dense<0.000000e+00> : vector<16x8xf32>
    %55 = tpu.matmul %54, %40, %cst_13 {dimension_numbers = #tpu.dot_dimension_numbers<[1], [0], [0], [1], [0, 0, 1, 1], [], []>} : vector<16x16xbf16>, vector<16x8xbf16>, vector<16x8xf32> -> vector<16x8xf32>
    %c0_14 = arith.constant 0 : index
    %c0_15 = arith.constant 0 : index
    %56 = vector.load %arg7[%c0_14, %c0_15] : memref<16x32xf32, #tpu.memory_space<vmem>>, vector<16x8xf32>
    tpu.vector_store %arg7[%c0_14, %c0_15], %55 {strides = array<i32>} : memref<16x32xf32, #tpu.memory_space<vmem>>, vector<16x8xf32>,
    %57 = vector.extract_strided_slice %29 {offsets = [0, 8], sizes = [16, 8], strides = [1, 1]} : vector<16x32xbf16> to vector<16x8xbf16>
    %58 = vector.extract_strided_slice %35 {offsets = [0, 8], sizes = [16, 8], strides = [1, 1]} : vector<16x32xbf16> to vector<16x8xbf16>
    %59 = vector.extract_strided_slice %37 {offsets = [0, 8], sizes = [16, 8], strides = [1, 1]} : vector<16x32xbf16> to vector<16x8xbf16>
    %cst_16 = arith.constant dense<0.000000e+00> : vector<16x16xf32>
    %60 = tpu.matmul %57, %58, %cst_16 {dimension_numbers = #tpu.dot_dimension_numbers<[1], [1], [0], [0], [0, 0, 1, 0], [], []>} : vector<16x8xbf16>, vector<16x8xbf16>, vector<16x16xf32> -> vector<16x16xf32>
    %cst_17 = arith.constant 0.353553385 : f32
    %61 = vector.broadcast %cst_17 : f32 to vector<16x16xf32>
    %62 = arith.mulf %60, %61 : vector<16x16xf32>
    %63 = arith.addf %62, %4 : vector<16x16xf32>
    %cst_18 = arith.constant dense<0xFF800000> : vector<16xf32>
    %64 = vector.multi_reduction <maximumf>, %63, %cst_18 [1] : vector<16x16xf32> to vector<16xf32>
    %65 = vector.shape_cast %64 : vector<16xf32> to vector<16x1xf32>
    %66 = vector.broadcast %65 : vector<16x1xf32> to vector<16x16xf32>
    %67 = arith.subf %63, %66 : vector<16x16xf32>
    %68 = math.exp %67 : vector<16x16xf32>
    %cst_19 = arith.constant dense<0.000000e+00> : vector<16xf32>
    %69 = vector.multi_reduction <add>, %68, %cst_19 [1] : vector<16x16xf32> to vector<16xf32>
    %70 = vector.shape_cast %69 : vector<16xf32> to vector<16x1xf32>
    %71 = vector.broadcast %70 : vector<16x1xf32> to vector<16x16xf32>
    %72 = arith.divf %68, %71 : vector<16x16xf32>
    %73 = arith.truncf %72 : vector<16x16xf32> to vector<16x16xbf16>
    %cst_20 = arith.constant dense<0.000000e+00> : vector<16x8xf32>
    %74 = tpu.matmul %73, %59, %cst_20 {dimension_numbers = #tpu.dot_dimension_numbers<[1], [0], [0], [1], [0, 0, 1, 1], [], []>} : vector<16x16xbf16>, vector<16x8xbf16>, vector<16x8xf32> -> vector<16x8xf32>
    %c0_21 = arith.constant 0 : index
    %c8 = arith.constant 8 : index
    %75 = vector.load %arg7[%c0_21, %c8] : memref<16x32xf32, #tpu.memory_space<vmem>>, vector<16x8xf32>
    tpu.vector_store %arg7[%c0_21, %c8], %74 {strides = array<i32>} : memref<16x32xf32, #tpu.memory_space<vmem>>, vector<16x8xf32>,
    %76 = vector.extract_strided_slice %29 {offsets = [0, 16], sizes = [16, 8], strides = [1, 1]} : vector<16x32xbf16> to vector<16x8xbf16>
    %77 = vector.extract_strided_slice %35 {offsets = [0, 16], sizes = [16, 8], strides = [1, 1]} : vector<16x32xbf16> to vector<16x8xbf16>
    %78 = vector.extract_strided_slice %37 {offsets = [0, 16], sizes = [16, 8], strides = [1, 1]} : vector<16x32xbf16> to vector<16x8xbf16>
    %cst_22 = arith.constant dense<0.000000e+00> : vector<16x16xf32>
    %79 = tpu.matmul %76, %77, %cst_22 {dimension_numbers = #tpu.dot_dimension_numbers<[1], [1], [0], [0], [0, 0, 1, 0], [], []>} : vector<16x8xbf16>, vector<16x8xbf16>, vector<16x16xf32> -> vector<16x16xf32>
    %cst_23 = arith.constant 0.353553385 : f32
    %80 = vector.broadcast %cst_23 : f32 to vector<16x16xf32>
    %81 = arith.mulf %79, %80 : vector<16x16xf32>
    %82 = arith.addf %81, %4 : vector<16x16xf32>
    %cst_24 = arith.constant dense<0xFF800000> : vector<16xf32>
    %83 = vector.multi_reduction <maximumf>, %82, %cst_24 [1] : vector<16x16xf32> to vector<16xf32>
    %84 = vector.shape_cast %83 : vector<16xf32> to vector<16x1xf32>
    %85 = vector.broadcast %84 : vector<16x1xf32> to vector<16x16xf32>
    %86 = arith.subf %82, %85 : vector<16x16xf32>
    %87 = math.exp %86 : vector<16x16xf32>
    %cst_25 = arith.constant dense<0.000000e+00> : vector<16xf32>
    %88 = vector.multi_reduction <add>, %87, %cst_25 [1] : vector<16x16xf32> to vector<16xf32>
    %89 = vector.shape_cast %88 : vector<16xf32> to vector<16x1xf32>
    %90 = vector.broadcast %89 : vector<16x1xf32> to vector<16x16xf32>
    %91 = arith.divf %87, %90 : vector<16x16xf32>
    %92 = arith.truncf %91 : vector<16x16xf32> to vector<16x16xbf16>
    %cst_26 = arith.constant dense<0.000000e+00> : vector<16x8xf32>
    %93 = tpu.matmul %92, %78, %cst_26 {dimension_numbers = #tpu.dot_dimension_numbers<[1], [0], [0], [1], [0, 0, 1, 1], [], []>} : vector<16x16xbf16>, vector<16x8xbf16>, vector<16x8xf32> -> vector<16x8xf32>
    %c0_27 = arith.constant 0 : index
    %c16 = arith.constant 16 : index
    %94 = vector.load %arg7[%c0_27, %c16] : memref<16x32xf32, #tpu.memory_space<vmem>>, vector<16x8xf32>
    tpu.vector_store %arg7[%c0_27, %c16], %93 {strides = array<i32>} : memref<16x32xf32, #tpu.memory_space<vmem>>, vector<16x8xf32>,
    %95 = vector.extract_strided_slice %29 {offsets = [0, 24], sizes = [16, 8], strides = [1, 1]} : vector<16x32xbf16> to vector<16x8xbf16>
    %96 = vector.extract_strided_slice %35 {offsets = [0, 24], sizes = [16, 8], strides = [1, 1]} : vector<16x32xbf16> to vector<16x8xbf16>
    %97 = vector.extract_strided_slice %37 {offsets = [0, 24], sizes = [16, 8], strides = [1, 1]} : vector<16x32xbf16> to vector<16x8xbf16>
    %cst_28 = arith.constant dense<0.000000e+00> : vector<16x16xf32>
    %98 = tpu.matmul %95, %96, %cst_28 {dimension_numbers = #tpu.dot_dimension_numbers<[1], [1], [0], [0], [0, 0, 1, 0], [], []>} : vector<16x8xbf16>, vector<16x8xbf16>, vector<16x16xf32> -> vector<16x16xf32>
    %cst_29 = arith.constant 0.353553385 : f32
    %99 = vector.broadcast %cst_29 : f32 to vector<16x16xf32>
    %100 = arith.mulf %98, %99 : vector<16x16xf32>
    %101 = arith.addf %100, %4 : vector<16x16xf32>
    %cst_30 = arith.constant dense<0xFF800000> : vector<16xf32>
    %102 = vector.multi_reduction <maximumf>, %101, %cst_30 [1] : vector<16x16xf32> to vector<16xf32>
    %103 = vector.shape_cast %102 : vector<16xf32> to vector<16x1xf32>
    %104 = vector.broadcast %103 : vector<16x1xf32> to vector<16x16xf32>
    %105 = arith.subf %101, %104 : vector<16x16xf32>
    %106 = math.exp %105 : vector<16x16xf32>
    %cst_31 = arith.constant dense<0.000000e+00> : vector<16xf32>
    %107 = vector.multi_reduction <add>, %106, %cst_31 [1] : vector<16x16xf32> to vector<16xf32>
    %108 = vector.shape_cast %107 : vector<16xf32> to vector<16x1xf32>
    %109 = vector.broadcast %108 : vector<16x1xf32> to vector<16x16xf32>
    %110 = arith.divf %106, %109 : vector<16x16xf32>
    %111 = arith.truncf %110 : vector<16x16xf32> to vector<16x16xbf16>
    %cst_32 = arith.constant dense<0.000000e+00> : vector<16x8xf32>
    %112 = tpu.matmul %111, %97, %cst_32 {dimension_numbers = #tpu.dot_dimension_numbers<[1], [0], [0], [1], [0, 0, 1, 1], [], []>} : vector<16x16xbf16>, vector<16x8xbf16>, vector<16x8xf32> -> vector<16x8xf32>
    %c0_33 = arith.constant 0 : index
    %c24 = arith.constant 24 : index
    %113 = vector.load %arg7[%c0_33, %c24] : memref<16x32xf32, #tpu.memory_space<vmem>>, vector<16x8xf32>
    tpu.vector_store %arg7[%c0_33, %c24], %112 {strides = array<i32>} : memref<16x32xf32, #tpu.memory_space<vmem>>, vector<16x8xf32>,
    %c0_34 = arith.constant 0 : index
    %c0_35 = arith.constant 0 : index
    %114 = vector.load %arg7[%c0_34, %c0_35] : memref<16x32xf32, #tpu.memory_space<vmem>>, vector<16x32xf32>
    %115 = arith.truncf %114 : vector<16x32xf32> to vector<16x32xbf16>
    %116 = vector.extract_strided_slice %7 {offsets = [0, 160], sizes = [32, 32], strides = [1, 1]} : vector<32x320xbf16> to vector<32x32xbf16>
    %cst_36 = arith.constant dense<0.000000e+00> : vector<16x32xf32>
    %117 = tpu.matmul %115, %116, %cst_36 {dimension_numbers = #tpu.dot_dimension_numbers<[1], [0], [0], [1], [0, 0, 1, 1], [], []>} : vector<16x32xbf16>, vector<32x32xbf16>, vector<16x32xf32> -> vector<16x32xf32>
    %118 = arith.addf %1, %117 : vector<16x32xf32>
    %119 = vector.extract_strided_slice %5 {offsets = [1, 0], sizes = [1, 32], strides = [1, 1]} : vector<5x32xf32> to vector<1x32xf32>
    %120 = arith.mulf %118, %118 : vector<16x32xf32>
    %cst_37 = arith.constant dense<0.000000e+00> : vector<16xf32>
    %121 = vector.multi_reduction <add>, %120, %cst_37 [1] : vector<16x32xf32> to vector<16xf32>
    %122 = vector.shape_cast %121 : vector<16xf32> to vector<16x1xf32>
    %cst_38 = arith.constant 3.200000e+01 : f32
    %123 = vector.broadcast %cst_38 : f32 to vector<16x1xf32>
    %124 = arith.divf %122, %123 : vector<16x1xf32>
    %cst_39 = arith.constant 9.99999997E-7 : f32
    %125 = vector.broadcast %cst_39 : f32 to vector<16x1xf32>
    %126 = arith.addf %124, %125 : vector<16x1xf32>
    %127 = math.rsqrt %126 : vector<16x1xf32>
    %128 = vector.broadcast %127 : vector<16x1xf32> to vector<16x32xf32>
    %129 = arith.mulf %118, %128 : vector<16x32xf32>
    %130 = vector.broadcast %119 : vector<1x32xf32> to vector<16x32xf32>
    %131 = arith.mulf %129, %130 : vector<16x32xf32>
    %132 = arith.truncf %131 : vector<16x32xf32> to vector<16x32xbf16>
    %133 = vector.extract_strided_slice %7 {offsets = [0, 192], sizes = [32, 128], strides = [1, 1]} : vector<32x320xbf16> to vector<32x128xbf16>
    %cst_40 = arith.constant dense<0.000000e+00> : vector<16x128xf32>
    %134 = tpu.matmul %132, %133, %cst_40 {dimension_numbers = #tpu.dot_dimension_numbers<[1], [0], [0], [1], [0, 0, 1, 1], [], []>} : vector<16x32xbf16>, vector<32x128xbf16>, vector<16x128xf32> -> vector<16x128xf32>
    %135 = vector.extract_strided_slice %134 {offsets = [0, 0], sizes = [16, 64], strides = [1, 1]} : vector<16x128xf32> to vector<16x64xf32>
    %136 = vector.extract_strided_slice %134 {offsets = [0, 64], sizes = [16, 64], strides = [1, 1]} : vector<16x128xf32> to vector<16x64xf32>
    %137 = arith.negf %135 : vector<16x64xf32>
    %138 = math.exp %137 : vector<16x64xf32>
    %cst_41 = arith.constant 1.000000e+00 : f32
    %139 = vector.broadcast %cst_41 : f32 to vector<16x64xf32>
    %140 = arith.addf %139, %138 : vector<16x64xf32>
    %141 = arith.divf %139, %140 : vector<16x64xf32>
    %142 = arith.mulf %135, %141 : vector<16x64xf32>
    %143 = arith.mulf %142, %136 : vector<16x64xf32>
    %144 = arith.truncf %143 : vector<16x64xf32> to vector<16x64xbf16>
    %c0_42 = arith.constant 0 : index
    %c0_43 = arith.constant 0 : index
    %c0_44 = arith.constant 0 : index
    %145 = vector.load %arg3[%c0_42, %c0_43, %c0_44] : memref<2x64x32xbf16, #tpu.memory_space<vmem>>, vector<1x64x32xbf16>
    %146 = vector.shape_cast %145 : vector<1x64x32xbf16> to vector<64x32xbf16>
    %cst_45 = arith.constant dense<0.000000e+00> : vector<16x32xf32>
    %147 = tpu.matmul %144, %146, %cst_45 {dimension_numbers = #tpu.dot_dimension_numbers<[1], [0], [0], [1], [0, 0, 1, 1], [], []>} : vector<16x64xbf16>, vector<64x32xbf16>, vector<16x32xf32> -> vector<16x32xf32>
    %148 = arith.addf %118, %147 : vector<16x32xf32>
    %c1 = arith.constant 1 : index
    %c0_46 = arith.constant 0 : index
    %c0_47 = arith.constant 0 : index
    %149 = vector.load %arg2[%c1, %c0_46, %c0_47] : memref<3x32x320xbf16, #tpu.memory_space<vmem>>, vector<1x32x320xbf16>
    %150 = vector.shape_cast %149 : vector<1x32x320xbf16> to vector<32x320xbf16>
    %151 = vector.extract_strided_slice %5 {offsets = [2, 0], sizes = [1, 32], strides = [1, 1]} : vector<5x32xf32> to vector<1x32xf32>
    %152 = arith.mulf %148, %148 : vector<16x32xf32>
    %cst_48 = arith.constant dense<0.000000e+00> : vector<16xf32>
    %153 = vector.multi_reduction <add>, %152, %cst_48 [1] : vector<16x32xf32> to vector<16xf32>
    %154 = vector.shape_cast %153 : vector<16xf32> to vector<16x1xf32>
    %cst_49 = arith.constant 3.200000e+01 : f32
    %155 = vector.broadcast %cst_49 : f32 to vector<16x1xf32>
    %156 = arith.divf %154, %155 : vector<16x1xf32>
    %cst_50 = arith.constant 9.99999997E-7 : f32
    %157 = vector.broadcast %cst_50 : f32 to vector<16x1xf32>
    %158 = arith.addf %156, %157 : vector<16x1xf32>
    %159 = math.rsqrt %158 : vector<16x1xf32>
    %160 = vector.broadcast %159 : vector<16x1xf32> to vector<16x32xf32>
    %161 = arith.mulf %148, %160 : vector<16x32xf32>
    %162 = vector.broadcast %151 : vector<1x32xf32> to vector<16x32xf32>
    %163 = arith.mulf %161, %162 : vector<16x32xf32>
    %164 = arith.truncf %163 : vector<16x32xf32> to vector<16x32xbf16>
    %165 = vector.extract_strided_slice %150 {offsets = [0, 0], sizes = [32, 160], strides = [1, 1]} : vector<32x320xbf16> to vector<32x160xbf16>
    %cst_51 = arith.constant dense<0.000000e+00> : vector<16x160xf32>
    %166 = tpu.matmul %164, %165, %cst_51 {dimension_numbers = #tpu.dot_dimension_numbers<[1], [0], [0], [1], [0, 0, 1, 1], [], []>} : vector<16x32xbf16>, vector<32x160xbf16>, vector<16x160xf32> -> vector<16x160xf32>
    %167 = vector.extract_strided_slice %166 {offsets = [0, 0], sizes = [16, 32], strides = [1, 1]} : vector<16x160xf32> to vector<16x32xf32>
    %168 = arith.mulf %167, %2 : vector<16x32xf32>
    %169 = vector.extract_strided_slice %166 {offsets = [0, 96], sizes = [16, 32], strides = [1, 1]} : vector<16x160xf32> to vector<16x32xf32>
    %170 = arith.mulf %169, %3 : vector<16x32xf32>
    %171 = arith.addf %168, %170 : vector<16x32xf32>
    %172 = arith.truncf %171 : vector<16x32xf32> to vector<16x32xbf16>
    %173 = vector.extract_strided_slice %166 {offsets = [0, 32], sizes = [16, 32], strides = [1, 1]} : vector<16x160xf32> to vector<16x32xf32>
    %174 = arith.mulf %173, %2 : vector<16x32xf32>
    %175 = vector.extract_strided_slice %166 {offsets = [0, 128], sizes = [16, 32], strides = [1, 1]} : vector<16x160xf32> to vector<16x32xf32>
    %176 = arith.mulf %175, %3 : vector<16x32xf32>
    %177 = arith.addf %174, %176 : vector<16x32xf32>
    %178 = arith.truncf %177 : vector<16x32xf32> to vector<16x32xbf16>
    %179 = vector.extract_strided_slice %166 {offsets = [0, 64], sizes = [16, 32], strides = [1, 1]} : vector<16x160xf32> to vector<16x32xf32>
    %180 = arith.truncf %179 : vector<16x32xf32> to vector<16x32xbf16>
    %181 = vector.extract_strided_slice %172 {offsets = [0, 0], sizes = [16, 8], strides = [1, 1]} : vector<16x32xbf16> to vector<16x8xbf16>
    %182 = vector.extract_strided_slice %178 {offsets = [0, 0], sizes = [16, 8], strides = [1, 1]} : vector<16x32xbf16> to vector<16x8xbf16>
    %183 = vector.extract_strided_slice %180 {offsets = [0, 0], sizes = [16, 8], strides = [1, 1]} : vector<16x32xbf16> to vector<16x8xbf16>
    %cst_52 = arith.constant dense<0.000000e+00> : vector<16x16xf32>
    %184 = tpu.matmul %181, %182, %cst_52 {dimension_numbers = #tpu.dot_dimension_numbers<[1], [1], [0], [0], [0, 0, 1, 0], [], []>} : vector<16x8xbf16>, vector<16x8xbf16>, vector<16x16xf32> -> vector<16x16xf32>
    %cst_53 = arith.constant 0.353553385 : f32
    %185 = vector.broadcast %cst_53 : f32 to vector<16x16xf32>
    %186 = arith.mulf %184, %185 : vector<16x16xf32>
    %187 = arith.addf %186, %4 : vector<16x16xf32>
    %cst_54 = arith.constant dense<0xFF800000> : vector<16xf32>
    %188 = vector.multi_reduction <maximumf>, %187, %cst_54 [1] : vector<16x16xf32> to vector<16xf32>
    %189 = vector.shape_cast %188 : vector<16xf32> to vector<16x1xf32>
    %190 = vector.broadcast %189 : vector<16x1xf32> to vector<16x16xf32>
    %191 = arith.subf %187, %190 : vector<16x16xf32>
    %192 = math.exp %191 : vector<16x16xf32>
    %cst_55 = arith.constant dense<0.000000e+00> : vector<16xf32>
    %193 = vector.multi_reduction <add>, %192, %cst_55 [1] : vector<16x16xf32> to vector<16xf32>
    %194 = vector.shape_cast %193 : vector<16xf32> to vector<16x1xf32>
    %195 = vector.broadcast %194 : vector<16x1xf32> to vector<16x16xf32>
    %196 = arith.divf %192, %195 : vector<16x16xf32>
    %197 = arith.truncf %196 : vector<16x16xf32> to vector<16x16xbf16>
    %cst_56 = arith.constant dense<0.000000e+00> : vector<16x8xf32>
    %198 = tpu.matmul %197, %183, %cst_56 {dimension_numbers = #tpu.dot_dimension_numbers<[1], [0], [0], [1], [0, 0, 1, 1], [], []>} : vector<16x16xbf16>, vector<16x8xbf16>, vector<16x8xf32> -> vector<16x8xf32>
    %c0_57 = arith.constant 0 : index
    %c0_58 = arith.constant 0 : index
    %199 = vector.load %arg7[%c0_57, %c0_58] : memref<16x32xf32, #tpu.memory_space<vmem>>, vector<16x8xf32>
    tpu.vector_store %arg7[%c0_57, %c0_58], %198 {strides = array<i32>} : memref<16x32xf32, #tpu.memory_space<vmem>>, vector<16x8xf32>,
    %200 = vector.extract_strided_slice %172 {offsets = [0, 8], sizes = [16, 8], strides = [1, 1]} : vector<16x32xbf16> to vector<16x8xbf16>
    %201 = vector.extract_strided_slice %178 {offsets = [0, 8], sizes = [16, 8], strides = [1, 1]} : vector<16x32xbf16> to vector<16x8xbf16>
    %202 = vector.extract_strided_slice %180 {offsets = [0, 8], sizes = [16, 8], strides = [1, 1]} : vector<16x32xbf16> to vector<16x8xbf16>
    %cst_59 = arith.constant dense<0.000000e+00> : vector<16x16xf32>
    %203 = tpu.matmul %200, %201, %cst_59 {dimension_numbers = #tpu.dot_dimension_numbers<[1], [1], [0], [0], [0, 0, 1, 0], [], []>} : vector<16x8xbf16>, vector<16x8xbf16>, vector<16x16xf32> -> vector<16x16xf32>
    %cst_60 = arith.constant 0.353553385 : f32
    %204 = vector.broadcast %cst_60 : f32 to vector<16x16xf32>
    %205 = arith.mulf %203, %204 : vector<16x16xf32>
    %206 = arith.addf %205, %4 : vector<16x16xf32>
    %cst_61 = arith.constant dense<0xFF800000> : vector<16xf32>
    %207 = vector.multi_reduction <maximumf>, %206, %cst_61 [1] : vector<16x16xf32> to vector<16xf32>
    %208 = vector.shape_cast %207 : vector<16xf32> to vector<16x1xf32>
    %209 = vector.broadcast %208 : vector<16x1xf32> to vector<16x16xf32>
    %210 = arith.subf %206, %209 : vector<16x16xf32>
    %211 = math.exp %210 : vector<16x16xf32>
    %cst_62 = arith.constant dense<0.000000e+00> : vector<16xf32>
    %212 = vector.multi_reduction <add>, %211, %cst_62 [1] : vector<16x16xf32> to vector<16xf32>
    %213 = vector.shape_cast %212 : vector<16xf32> to vector<16x1xf32>
    %214 = vector.broadcast %213 : vector<16x1xf32> to vector<16x16xf32>
    %215 = arith.divf %211, %214 : vector<16x16xf32>
    %216 = arith.truncf %215 : vector<16x16xf32> to vector<16x16xbf16>
    %cst_63 = arith.constant dense<0.000000e+00> : vector<16x8xf32>
    %217 = tpu.matmul %216, %202, %cst_63 {dimension_numbers = #tpu.dot_dimension_numbers<[1], [0], [0], [1], [0, 0, 1, 1], [], []>} : vector<16x16xbf16>, vector<16x8xbf16>, vector<16x8xf32> -> vector<16x8xf32>
    %c0_64 = arith.constant 0 : index
    %c8_65 = arith.constant 8 : index
    %218 = vector.load %arg7[%c0_64, %c8_65] : memref<16x32xf32, #tpu.memory_space<vmem>>, vector<16x8xf32>
    tpu.vector_store %arg7[%c0_64, %c8_65], %217 {strides = array<i32>} : memref<16x32xf32, #tpu.memory_space<vmem>>, vector<16x8xf32>,
    %219 = vector.extract_strided_slice %172 {offsets = [0, 16], sizes = [16, 8], strides = [1, 1]} : vector<16x32xbf16> to vector<16x8xbf16>
    %220 = vector.extract_strided_slice %178 {offsets = [0, 16], sizes = [16, 8], strides = [1, 1]} : vector<16x32xbf16> to vector<16x8xbf16>
    %221 = vector.extract_strided_slice %180 {offsets = [0, 16], sizes = [16, 8], strides = [1, 1]} : vector<16x32xbf16> to vector<16x8xbf16>
    %cst_66 = arith.constant dense<0.000000e+00> : vector<16x16xf32>
    %222 = tpu.matmul %219, %220, %cst_66 {dimension_numbers = #tpu.dot_dimension_numbers<[1], [1], [0], [0], [0, 0, 1, 0], [], []>} : vector<16x8xbf16>, vector<16x8xbf16>, vector<16x16xf32> -> vector<16x16xf32>
    %cst_67 = arith.constant 0.353553385 : f32
    %223 = vector.broadcast %cst_67 : f32 to vector<16x16xf32>
    %224 = arith.mulf %222, %223 : vector<16x16xf32>
    %225 = arith.addf %224, %4 : vector<16x16xf32>
    %cst_68 = arith.constant dense<0xFF800000> : vector<16xf32>
    %226 = vector.multi_reduction <maximumf>, %225, %cst_68 [1] : vector<16x16xf32> to vector<16xf32>
    %227 = vector.shape_cast %226 : vector<16xf32> to vector<16x1xf32>
    %228 = vector.broadcast %227 : vector<16x1xf32> to vector<16x16xf32>
    %229 = arith.subf %225, %228 : vector<16x16xf32>
    %230 = math.exp %229 : vector<16x16xf32>
    %cst_69 = arith.constant dense<0.000000e+00> : vector<16xf32>
    %231 = vector.multi_reduction <add>, %230, %cst_69 [1] : vector<16x16xf32> to vector<16xf32>
    %232 = vector.shape_cast %231 : vector<16xf32> to vector<16x1xf32>
    %233 = vector.broadcast %232 : vector<16x1xf32> to vector<16x16xf32>
    %234 = arith.divf %230, %233 : vector<16x16xf32>
    %235 = arith.truncf %234 : vector<16x16xf32> to vector<16x16xbf16>
    %cst_70 = arith.constant dense<0.000000e+00> : vector<16x8xf32>
    %236 = tpu.matmul %235, %221, %cst_70 {dimension_numbers = #tpu.dot_dimension_numbers<[1], [0], [0], [1], [0, 0, 1, 1], [], []>} : vector<16x16xbf16>, vector<16x8xbf16>, vector<16x8xf32> -> vector<16x8xf32>
    %c0_71 = arith.constant 0 : index
    %c16_72 = arith.constant 16 : index
    %237 = vector.load %arg7[%c0_71, %c16_72] : memref<16x32xf32, #tpu.memory_space<vmem>>, vector<16x8xf32>
    tpu.vector_store %arg7[%c0_71, %c16_72], %236 {strides = array<i32>} : memref<16x32xf32, #tpu.memory_space<vmem>>, vector<16x8xf32>,
    %238 = vector.extract_strided_slice %172 {offsets = [0, 24], sizes = [16, 8], strides = [1, 1]} : vector<16x32xbf16> to vector<16x8xbf16>
    %239 = vector.extract_strided_slice %178 {offsets = [0, 24], sizes = [16, 8], strides = [1, 1]} : vector<16x32xbf16> to vector<16x8xbf16>
    %240 = vector.extract_strided_slice %180 {offsets = [0, 24], sizes = [16, 8], strides = [1, 1]} : vector<16x32xbf16> to vector<16x8xbf16>
    %cst_73 = arith.constant dense<0.000000e+00> : vector<16x16xf32>
    %241 = tpu.matmul %238, %239, %cst_73 {dimension_numbers = #tpu.dot_dimension_numbers<[1], [1], [0], [0], [0, 0, 1, 0], [], []>} : vector<16x8xbf16>, vector<16x8xbf16>, vector<16x16xf32> -> vector<16x16xf32>
    %cst_74 = arith.constant 0.353553385 : f32
    %242 = vector.broadcast %cst_74 : f32 to vector<16x16xf32>
    %243 = arith.mulf %241, %242 : vector<16x16xf32>
    %244 = arith.addf %243, %4 : vector<16x16xf32>
    %cst_75 = arith.constant dense<0xFF800000> : vector<16xf32>
    %245 = vector.multi_reduction <maximumf>, %244, %cst_75 [1] : vector<16x16xf32> to vector<16xf32>
    %246 = vector.shape_cast %245 : vector<16xf32> to vector<16x1xf32>
    %247 = vector.broadcast %246 : vector<16x1xf32> to vector<16x16xf32>
    %248 = arith.subf %244, %247 : vector<16x16xf32>
    %249 = math.exp %248 : vector<16x16xf32>
    %cst_76 = arith.constant dense<0.000000e+00> : vector<16xf32>
    %250 = vector.multi_reduction <add>, %249, %cst_76 [1] : vector<16x16xf32> to vector<16xf32>
    %251 = vector.shape_cast %250 : vector<16xf32> to vector<16x1xf32>
    %252 = vector.broadcast %251 : vector<16x1xf32> to vector<16x16xf32>
    %253 = arith.divf %249, %252 : vector<16x16xf32>
    %254 = arith.truncf %253 : vector<16x16xf32> to vector<16x16xbf16>
    %cst_77 = arith.constant dense<0.000000e+00> : vector<16x8xf32>
    %255 = tpu.matmul %254, %240, %cst_77 {dimension_numbers = #tpu.dot_dimension_numbers<[1], [0], [0], [1], [0, 0, 1, 1], [], []>} : vector<16x16xbf16>, vector<16x8xbf16>, vector<16x8xf32> -> vector<16x8xf32>
    %c0_78 = arith.constant 0 : index
    %c24_79 = arith.constant 24 : index
    %256 = vector.load %arg7[%c0_78, %c24_79] : memref<16x32xf32, #tpu.memory_space<vmem>>, vector<16x8xf32>
    tpu.vector_store %arg7[%c0_78, %c24_79], %255 {strides = array<i32>} : memref<16x32xf32, #tpu.memory_space<vmem>>, vector<16x8xf32>,
    %c0_80 = arith.constant 0 : index
    %c0_81 = arith.constant 0 : index
    %257 = vector.load %arg7[%c0_80, %c0_81] : memref<16x32xf32, #tpu.memory_space<vmem>>, vector<16x32xf32>
    %258 = arith.truncf %257 : vector<16x32xf32> to vector<16x32xbf16>
    %259 = vector.extract_strided_slice %150 {offsets = [0, 160], sizes = [32, 32], strides = [1, 1]} : vector<32x320xbf16> to vector<32x32xbf16>
    %cst_82 = arith.constant dense<0.000000e+00> : vector<16x32xf32>
    %260 = tpu.matmul %258, %259, %cst_82 {dimension_numbers = #tpu.dot_dimension_numbers<[1], [0], [0], [1], [0, 0, 1, 1], [], []>} : vector<16x32xbf16>, vector<32x32xbf16>, vector<16x32xf32> -> vector<16x32xf32>
    %261 = arith.addf %148, %260 : vector<16x32xf32>
    %262 = vector.extract_strided_slice %5 {offsets = [3, 0], sizes = [1, 32], strides = [1, 1]} : vector<5x32xf32> to vector<1x32xf32>
    %263 = arith.mulf %261, %261 : vector<16x32xf32>
    %cst_83 = arith.constant dense<0.000000e+00> : vector<16xf32>
    %264 = vector.multi_reduction <add>, %263, %cst_83 [1] : vector<16x32xf32> to vector<16xf32>
    %265 = vector.shape_cast %264 : vector<16xf32> to vector<16x1xf32>
    %cst_84 = arith.constant 3.200000e+01 : f32
    %266 = vector.broadcast %cst_84 : f32 to vector<16x1xf32>
    %267 = arith.divf %265, %266 : vector<16x1xf32>
    %cst_85 = arith.constant 9.99999997E-7 : f32
    %268 = vector.broadcast %cst_85 : f32 to vector<16x1xf32>
    %269 = arith.addf %267, %268 : vector<16x1xf32>
    %270 = math.rsqrt %269 : vector<16x1xf32>
    %271 = vector.broadcast %270 : vector<16x1xf32> to vector<16x32xf32>
    %272 = arith.mulf %261, %271 : vector<16x32xf32>
    %273 = vector.broadcast %262 : vector<1x32xf32> to vector<16x32xf32>
    %274 = arith.mulf %272, %273 : vector<16x32xf32>
    %275 = arith.truncf %274 : vector<16x32xf32> to vector<16x32xbf16>
    %276 = vector.extract_strided_slice %150 {offsets = [0, 192], sizes = [32, 128], strides = [1, 1]} : vector<32x320xbf16> to vector<32x128xbf16>
    %cst_86 = arith.constant dense<0.000000e+00> : vector<16x128xf32>
    %277 = tpu.matmul %275, %276, %cst_86 {dimension_numbers = #tpu.dot_dimension_numbers<[1], [0], [0], [1], [0, 0, 1, 1], [], []>} : vector<16x32xbf16>, vector<32x128xbf16>, vector<16x128xf32> -> vector<16x128xf32>
    %278 = vector.extract_strided_slice %277 {offsets = [0, 0], sizes = [16, 64], strides = [1, 1]} : vector<16x128xf32> to vector<16x64xf32>
    %279 = vector.extract_strided_slice %277 {offsets = [0, 64], sizes = [16, 64], strides = [1, 1]} : vector<16x128xf32> to vector<16x64xf32>
    %280 = arith.negf %278 : vector<16x64xf32>
    %281 = math.exp %280 : vector<16x64xf32>
    %cst_87 = arith.constant 1.000000e+00 : f32
    %282 = vector.broadcast %cst_87 : f32 to vector<16x64xf32>
    %283 = arith.addf %282, %281 : vector<16x64xf32>
    %284 = arith.divf %282, %283 : vector<16x64xf32>
    %285 = arith.mulf %278, %284 : vector<16x64xf32>
    %286 = arith.mulf %285, %279 : vector<16x64xf32>
    %287 = arith.truncf %286 : vector<16x64xf32> to vector<16x64xbf16>
    %c1_88 = arith.constant 1 : index
    %c0_89 = arith.constant 0 : index
    %c0_90 = arith.constant 0 : index
    %288 = vector.load %arg3[%c1_88, %c0_89, %c0_90] : memref<2x64x32xbf16, #tpu.memory_space<vmem>>, vector<1x64x32xbf16>
    %289 = vector.shape_cast %288 : vector<1x64x32xbf16> to vector<64x32xbf16>
    %cst_91 = arith.constant dense<0.000000e+00> : vector<16x32xf32>
    %290 = tpu.matmul %287, %289, %cst_91 {dimension_numbers = #tpu.dot_dimension_numbers<[1], [0], [0], [1], [0, 0, 1, 1], [], []>} : vector<16x64xbf16>, vector<64x32xbf16>, vector<16x32xf32> -> vector<16x32xf32>
    %291 = arith.addf %261, %290 : vector<16x32xf32>
    %292 = vector.extract_strided_slice %5 {offsets = [4, 0], sizes = [1, 32], strides = [1, 1]} : vector<5x32xf32> to vector<1x32xf32>
    %293 = arith.mulf %291, %291 : vector<16x32xf32>
    %cst_92 = arith.constant dense<0.000000e+00> : vector<16xf32>
    %294 = vector.multi_reduction <add>, %293, %cst_92 [1] : vector<16x32xf32> to vector<16xf32>
    %295 = vector.shape_cast %294 : vector<16xf32> to vector<16x1xf32>
    %cst_93 = arith.constant 3.200000e+01 : f32
    %296 = vector.broadcast %cst_93 : f32 to vector<16x1xf32>
    %297 = arith.divf %295, %296 : vector<16x1xf32>
    %cst_94 = arith.constant 9.99999997E-7 : f32
    %298 = vector.broadcast %cst_94 : f32 to vector<16x1xf32>
    %299 = arith.addf %297, %298 : vector<16x1xf32>
    %300 = math.rsqrt %299 : vector<16x1xf32>
    %301 = vector.broadcast %300 : vector<16x1xf32> to vector<16x32xf32>
    %302 = arith.mulf %291, %301 : vector<16x32xf32>
    %303 = vector.broadcast %292 : vector<1x32xf32> to vector<16x32xf32>
    %304 = arith.mulf %302, %303 : vector<16x32xf32>
    %c0_95 = arith.constant 0 : index
    %c0_96 = arith.constant 0 : index
    %305 = vector.load %arg5[%c0_95, %c0_96] : memref<16x32xf32, #tpu.memory_space<vmem>>, vector<16x32xf32>
    tpu.vector_store %arg5[%c0_95, %c0_96], %304 {strides = array<i32>} : memref<16x32xf32, #tpu.memory_space<vmem>>, vector<16x32xf32>,
    %306 = arith.truncf %304 : vector<16x32xf32> to vector<16x32xbf16>
    %c2 = arith.constant 2 : index
    %c0_97 = arith.constant 0 : index
    %c0_98 = arith.constant 0 : index
    %307 = vector.load %arg2[%c2, %c0_97, %c0_98] : memref<3x32x320xbf16, #tpu.memory_space<vmem>>, vector<1x32x320xbf16>
    %308 = vector.shape_cast %307 : vector<1x32x320xbf16> to vector<32x320xbf16>
    %309 = vector.extract_strided_slice %308 {offsets = [0, 0], sizes = [32, 128], strides = [1, 1]} : vector<32x320xbf16> to vector<32x128xbf16>
    %cst_99 = arith.constant dense<0.000000e+00> : vector<16x128xf32>
    %310 = tpu.matmul %306, %309, %cst_99 {dimension_numbers = #tpu.dot_dimension_numbers<[1], [0], [0], [1], [0, 0, 1, 1], [], []>} : vector<16x32xbf16>, vector<32x128xbf16>, vector<16x128xf32> -> vector<16x128xf32>
    %c0_100 = arith.constant 0 : index
    %c0_101 = arith.constant 0 : index
    %311 = vector.load %arg6[%c0_100, %c0_101] : memref<16x128xf32, #tpu.memory_space<vmem>>, vector<16x128xf32>
    tpu.vector_store %arg6[%c0_100, %c0_101], %310 {strides = array<i32>} : memref<16x128xf32, #tpu.memory_space<vmem>>, vector<16x128xf32>,
    return
  }
  func.func @transform_0(%arg0: i32) -> (i32, i32) {
    %c0_i32 = arith.constant 0 : i32
    %c0_i32_0 = arith.constant 0 : i32
    %c0_i32_1 = arith.constant 0 : i32
    return %c0_i32, %c0_i32_0 : i32, i32
  }
  func.func @transform_1(%arg0: i32) -> (i32, i32, i32) {
    %c0_i32 = arith.constant 0 : i32
    %c0_i32_0 = arith.constant 0 : i32
    %c0_i32_1 = arith.constant 0 : i32
    %c0_i32_2 = arith.constant 0 : i32
    return %c0_i32, %c0_i32_0, %c0_i32_1 : i32, i32, i32
  }
  func.func @transform_2(%arg0: i32) -> (i32, i32, i32) {
    %c0_i32 = arith.constant 0 : i32
    %c0_i32_0 = arith.constant 0 : i32
    %c0_i32_1 = arith.constant 0 : i32
    %c0_i32_2 = arith.constant 0 : i32
    return %c0_i32, %c0_i32_0, %c0_i32_1 : i32, i32, i32
  }
  func.func @transform_3(%arg0: i32) -> (i32, i32) {
    %c0_i32 = arith.constant 0 : i32
    %c0_i32_0 = arith.constant 0 : i32
    %c0_i32_1 = arith.constant 0 : i32
    return %c0_i32, %c0_i32_0 : i32, i32
  }
  func.func @transform_4(%arg0: i32) -> (i32, i32) {
    %c0_i32 = arith.constant 0 : i32
    %c0_i32_0 = arith.constant 0 : i32
    %c0_i32_1 = arith.constant 0 : i32
    return %c0_i32, %c0_i32_0 : i32, i32
  }
  func.func @transform_5(%arg0: i32) -> (i32, i32) {
    %c0_i32 = arith.constant 0 : i32
    %c0_i32_0 = arith.constant 0 : i32
    %c0_i32_1 = arith.constant 0 : i32
    return %c0_i32, %c0_i32_0 : i32, i32
  }
}

</mosaic_0001>

<bundles_post_ra>
// kernel: tpu_custom_call.1
= control target key start
LH: loop header
LB: loop body
LE: loop exit
PB: predicated region body
PF: predicated region fallthrough
CT: control target
= control target key end

     0   :  { %11 = vsyncpa [#allocation4], 0  ;;  %s3037_s0 = inlined_call_operand.vmem [shape: f32[16,112], index: 0, kind: input, shape index: {}]   ;;  %s3038_s1 = inlined_call_operand.hbm [shape: bf16[3,32,320], index: 1, kind: input, shape index: {}]   ;;  %s3039_s2 = inlined_call_operand.vmem [shape: bf16[2,64,32], index: 2, kind: input, shape index: {}]   ;;  %s3040_s3 = inlined_call_operand.vmem [shape: f32[5,32], index: 3, kind: input, shape index: {}]   ;;  %s3041_s4 = inlined_call_operand.hbm [shape: f32[16,32], index: 4, kind: output, shape index: {0}]   ;;  %s3042_s5 = inlined_call_operand.hbm [shape: f32[16,128], index: 5, kind: output, shape index: {1}]  }
   0x1   :  { %12 = vsyncpa [#allocation5], 0 }
   0x2   :  { %13 = vsyncpa [#allocation8], 0  ;;  %s2508_s18 = smov [#allocation3]   ;;  %s2436_s22 = scalar_lea.hbm %s3038_s1, 2304 }
   0x3   :  { %s21_s19 = sshll.u32 %s2508_s18, 4  ;;  %p2437_p0 = scmp.ne.s32.totalorder %s3038_s1, %s2436_s22  ;;  %s22_s19 = int_to_ptr.vmem [resolvable:$true] %s21_s19 }
   0x4   :  { %p2440_p1 = scmp.lt.u32.totalorder %s2436_s22, %s3038_s1 }
   0x6   :  { %p2442_p2 = pnand %p2440_p1, %p2437_p0 }
   0x8   :  { %2445 = shalt.err (!%p2442_p2)
}
   0x9   :  { %s2446_s27 = scalar_lea.vmem %s22_s19, 2304  ;;  %p2451_p4 = scmp.lt.s32.totalorder %s22_s19, %s22_s19 }
   0xa   :  { %p2447_p3 = scmp.ne.s32.totalorder %s22_s19, %s2446_s27  ;;  %p2452_p5 = scmp.lt.s32.totalorder %s2446_s27, %s2446_s27 }
   0xc   :  { %p2453_p6 = por %p2452_p5, %p2451_p4 }
   0xe   :  { %p2454_p7 = pnand %p2453_p6, %p2447_p3 }
  0x10   :  { %2457 = shalt.err (!%p2454_p7)
}
  0x11   :  { %s2509_s28 = smov 192   ;;  %s2510_s29 = smov 12  }
  0x12   :  { %27 = dma.hbm_to_vmem [thread:$0]  %s3038_s1, 2304, %s22_s19, [#allocation4], %s2509_s28, %s2509_s28, %s2510_s29  }
  0x13   :  { %2502 = dma.done.wait [#allocation4], 2304  }
  0x14   :  { %2503 = vsyncadd [#allocation4], 4294964992  ;;  %v2577_v0 = vld [vmem:[%s3037_s0] sm:$0xff]  ;;  %vm49_vm0 = vcmask 261120   ;;  %v2582_v1 = vld [vmem:[%s3037_s0 + $0x8] sm:$0xff]  ;;  %v2511_v9 = vmov 0   ;;  %v65_v16 = vlaneseq }
  0x15   :  { %v47_v2 = vmul.f32 %v2577_v0, %v2577_v0  ;;  %v48_v3 = vmul.f32 %v2582_v1, %v2582_v1  ;;  %v2590_v6 = vld [vmem:[#allocation3 + $0x4] ss:$12 sps:$4 sm:$0xff]   ;;  %v2309_v7 = vld [vmem:[#allocation3] ss:$12 sps:$4 sm:$0xff]   ;;  %v2592_v8 = vld [vmem:[#allocation3 + $0x1c] ss:$12 sps:$4 sm:$0xff]   ;;  %127 = vmatprep.mubr.bf16.mxu0 %v2511_v9 }
  0x16   :  { %95 = vmatprep.subr.bf16.mxu0 %v2590_v6  ;;  %v2312_v10 = vld [vmem:[#allocation3 + $0x18] ss:$12 sps:$4 sm:$0xff]   ;;  %s2512_s1 = smov 64   ;;  %s2513_s11 = smov 32   ;;  %v2605_v18 = vshrl.u32 %v65_v16, 7  ;;  %v2515_v42 = vmov 0.0  }
  0x17   :  { %v50_v4 = vsel %vm49_vm0, %v47_v2, 0.0  ;;  %v53_v5 = vsel %vm49_vm0, %v48_v3, 0.0  ;;  %96 = vmatpush1.bf16.msra.mxu0 %v2309_v7  ;;  %169 = vrot.lane.b32.xlu1 %v2577_v0, %s2512_s1  ;;  %v2611_v21 = vld [vmem:[%s3040_s3] sm:$0x1f]  ;;  %s2514_s14 = smov 96   ;;  %vm2516_vm1 = vmmov 0  }
  0x18   :  { %51 = vadd.xlane.f32.xlu0 %v50_v4  ;;  %97 = vmatprep.subr.bf16.mxu0 %v2592_v8  ;;  %v67_v19 = vsub.s32 0, %v2605_v18  ;;  %s2517_s15 = smov 88   ;;  %s2518_s16 = smov 80   ;;  %vm192_vm2 = vcmask 64512   ;;  %vm244_vm3 = vcmask 130048   ;;  %vm452_vm4 = vcmask 130112  }
  0x19   :  { %2123 = vmatprep.subr.bf16.mxu1 %v2515_v42  ;;  %2125 = vmatprep.mubr.msk.bf16.mxu1 %vm2516_vm1, %v2515_v42  ;;  %s2519_s17 = smov 72   ;;  %s2520_s18 = smov 120   ;;  %vm588_vm5 = vcmask 195712   ;;  %vm724_vm6 = vcmask 261312   ;;  %vm823_vm7 = vcmask 523264  }
  0x1a   :  { %v68_v23 = vrot.slane %v2611_v21, %v67_v19  ;;  %s2521_s19 = smov 112   ;;  %s2522_s20 = smov 104  }
  0x1b   :  { %98 = vmatpush1.bf16.msra.mxu0 %v2312_v10  ;;  %171 = vrot.lane.b32.xlu1 %v2582_v1, %s2512_s1  ;;  %s2523_s21 = smov 48   ;;  %s2524_s22 = smov 40  }
  0x1c   :  { %54 = vadd.xlane.f32.xlu0 %v53_v5  ;;  %2129 = vmatprep.subr.bf16.mxu0 %v2515_v42  ;;  %s2525_s23 = smov 56   ;;  %s2526_s24 = smov 8  }
  0x1d   :  { %s2527_s25 = smov 16   ;;  %s2528_s26 = smov 24  }
  0x1f   :  { %150 = vrot.lane.b32.xlu1 %v2582_v1, %s2513_s11 }
  0x32   :  { %148 = vrot.lane.b32.xlu0 %v2577_v0, %s2513_s11 }
  0x89   :  { %v2617_v29 = vpop.permute.xlu1 %169 }
  0x8d   :  { %v2619_v30 = vpop.permute.xlu1 %171 }
  0x91   :  { %v2621_v32 = vpop.permute.xlu1 %150 }
  0xa5   :  { %v52_v11 = vpop.xlane.xlu0 %51 }
  0xa6   :  { %v57_v12 = vmul.f32 0.03125, %v52_v11 }
  0xa8   :  { %v59_v13 = vadd.f32 1e-06, %v57_v12 }
  0xa9   :  { %v55_v14 = vpop.xlane.xlu0 %54 }
  0xaa   :  { %2333 = vrsqrt.f32 %v59_v13  ;;  %v58_v15 = vmul.f32 0.03125, %v55_v14 }
  0xac   :  { %v60_v17 = vadd.f32 1e-06, %v58_v15 }
  0xad   :  { %v2633_v40 = vpop.permute.xlu0 %148 }
  0xae   :  { %2335 = vrsqrt.f32 %v60_v17 }
  0xb4   :  { %v2334_v20 = vpop.eup %2333 }
  0xb5   :  { %v63_v22 = vmul.f32 %v2334_v20, %v2577_v0 }
  0xb7   :  { %v69_v26 = vmul.f32 %v68_v23, %v63_v22 }
  0xb8   :  { %v2336_v24 = vpop.eup %2335 }
  0xb9   :  { %v64_v25 = vmul.f32 %v2336_v24, %v2582_v1 }
  0xbb   :  { %v70_v27 = vmul.f32 %v68_v23, %v64_v25 }
  0xbd   :  { %v71_v28 = vpack.c.bf16 %v70_v27, %v69_v26 }
  0xbf   :  { %2011 = vmatmul.mubr.msk.bf16.vlgmr.msra.gmra.mrb[0].mxu0 %vm49_vm0, %v71_v28 }
  0xc0   :  { %2131 = vmatprep.mubr.msk.bf16.mxu0 %vm2516_vm1, %v2515_v42 }
 0x192   :  { %v129_v31 = vpop.f32.mrb[0].mxu0 }
 0x193   :  { %v131_v33 = vpop.f32.mrb[1].mxu0  ;;  %v154_v41 = vmul.f32 %v2633_v40, %v129_v31  ;;  %v167_v44 = vmul.f32 %v129_v31, %v2577_v0 }
 0x194   :  { %v175_v34 = vmul.f32 %v2617_v29, %v131_v33  ;;  %v133_v35 = vpop.f32.mrb[2].mxu0 }
 0x195   :  { %v2624_v36 = vpack.c.bf16 %v133_v35, %v129_v31  ;;  %v135_v37 = vpop.f32.mrb[3].mxu0  ;;  %v155_v38 = vmul.f32 %v2621_v32, %v133_v35  ;;  %v168_v45 = vmul.f32 %v133_v35, %v2582_v1 }
 0x196   :  { %179 = vrot.lane.b32.xlu1 %v175_v34, %s2513_s11  ;;  %v176_v39 = vmul.f32 %v2619_v30, %v135_v37 }
 0x197   :  { %160 = vrot.lane.b32.xlu0 %v155_v38, %s2513_s11 }
 0x19a   :  { %181 = vrot.lane.b32.xlu1 %v176_v39, %s2513_s11 }
 0x19e   :  { %140 = vrot.lane.b32.xlu1 %v2577_v0, %s2514_s14 }
 0x1a2   :  { %142 = vrot.lane.b32.xlu1 %v2582_v1, %s2514_s14 }
 0x1a6   :  { %158 = vrot.lane.b32.xlu1 %v154_v41, %s2513_s11 }
 0x208   :  { %v180_v43 = vpop.permute.xlu1 %179 }
 0x209   :  { %v185_v47 = vadd.f32 %v180_v43, %v167_v44  ;;  %v161_v54 = vpop.permute.xlu0 %160 }
 0x20c   :  { %v182_v46 = vpop.permute.xlu1 %181 }
 0x20d   :  { %v186_v48 = vadd.f32 %v182_v46, %v168_v45 }
 0x20f   :  { %v187_v49 = vpack.c.bf16 %v186_v48, %v185_v47 }
 0x210   :  { %v2647_v50 = vpop.permute.xlu1 %140 }
 0x211   :  { %321 = vrot.lane.b32.xlu0 %v187_v49, %s2517_s15  ;;  %190 = vrot.lane.b32.xlu1 %v187_v49, %s2514_s14  ;;  %v146_v53 = vmul.f32 %v2647_v50, %v129_v31 }
 0x214   :  { %v2651_v51 = vpop.permute.xlu1 %142 }
 0x215   :  { %v147_v52 = vmul.f32 %v2651_v51, %v133_v35  ;;  %457 = vrot.lane.b32.xlu0 %v187_v49, %s2518_s16 }
 0x217   :  { %v165_v56 = vadd.f32 %v161_v54, %v147_v52 }
 0x218   :  { %v159_v55 = vpop.permute.xlu1 %158 }
 0x219   :  { %v164_v57 = vadd.f32 %v159_v55, %v146_v53  ;;  %593 = vrot.lane.b32.xlu0 %v187_v49, %s2519_s17 }
 0x21b   :  { %v166_v58 = vpack.c.bf16 %v165_v56, %v164_v57 }
 0x21d   :  { %319 = vrot.lane.b32.xlu1 %v166_v58, %s2520_s18 }
 0x221   :  { %455 = vrot.lane.b32.xlu1 %v166_v58, %s2521_s19 }
 0x225   :  { %591 = vrot.lane.b32.xlu1 %v166_v58, %s2522_s20 }
 0x283   :  { %v191_v59 = vpop.permute.xlu1 %190  ;;  %v322_v61 = vpop.permute.xlu0 %321 }
 0x284   :  { %v197_v60 = vsel %vm192_vm2, %v191_v59, 0  ;;  %v327_v62 = vsel %vm192_vm2, %v322_v61, 0 }
 0x285   :  { %2124 = vmatpush3.bf16.xpose.msra.mxu1 %v197_v60 }
 0x286   :  { %2135 = vmatprep.subr.bf16.mxu1 %v2515_v42 }
 0x287   :  { %v458_v63 = vpop.permute.xlu0 %457 }
 0x288   :  { %v463_v3 = vsel %vm192_vm2, %v458_v63, 0 }
 0x28b   :  { %v594_v4 = vpop.permute.xlu0 %593 }
 0x28c   :  { %2126 = vmatmul.mubr.msk.bf16.vlgmr.msra.gmra.mrb[0].mxu1 %vm192_vm2, %v166_v58  ;;  %v599_v7 = vsel %vm192_vm2, %v594_v4, 0 }
 0x28d   :  { %2136 = vmatpush3.bf16.xpose.msra.mxu1 %v327_v62  ;;  %2137 = vmatprep.mubr.msk.bf16.mxu1 %vm2516_vm1, %v2515_v42 }
 0x28e   :  { %2147 = vmatprep.subr.bf16.mxu1 %v2515_v42 }
 0x28f   :  { %v320_v2 = vpop.permute.xlu1 %319 }
 0x293   :  { %v456_v5 = vpop.permute.xlu1 %455 }
 0x294   :  { %2138 = vmatmul.mubr.msk.bf16.vlgmr.msra.gmra.mrb[4].mxu1 %vm192_vm2, %v320_v2 }
 0x295   :  { %2148 = vmatpush3.bf16.xpose.msra.mxu1 %v463_v3  ;;  %2149 = vmatprep.mubr.msk.bf16.mxu1 %vm2516_vm1, %v2515_v42 }
 0x296   :  { %2159 = vmatprep.subr.bf16.mxu1 %v2515_v42 }
 0x297   :  { %v592_v10 = vpop.permute.xlu1 %591 }
 0x29c   :  { %2150 = vmatmul.mubr.msk.bf16.vlgmr.msra.gmra.mrb[8].mxu1 %vm192_vm2, %v456_v5 }
 0x29d   :  { %2160 = vmatpush3.bf16.xpose.msra.mxu1 %v599_v7  ;;  %2161 = vmatprep.mubr.msk.bf16.mxu1 %vm2516_vm1, %v2515_v42 }
 0x29e   :  { %2171 = vmatprep.subr.bf16.mxu1 %v2515_v42 }
 0x2a4   :  { %2162 = vmatmul.mubr.msk.bf16.vlgmr.msra.gmra.mrb[12].mxu1 %vm192_vm2, %v592_v10 }
 0x2a5   :  { %2175 = vmatprep.mubr.msk.bf16.mxu1 %vm2516_vm1, %v2515_v42 }
 0x35f   :  { %v233_v11 = vpop.f32.mrb[0].mxu1 }
 0x360   :  { %v240_v12 = vmul.f32 0.35355338, %v233_v11  ;;  %v2127_v13 = vpop.f32.mrb[1].mxu1 }
 0x361   :  { %v236_v14 = vpop.f32.mrb[2].mxu1 }
 0x362   :  { %v241_v15 = vmul.f32 0.35355338, %v236_v14  ;;  %v2128_v16 = vpop.f32.mrb[3].mxu1  ;;  %v242_v17 = vadd.f32 %v240_v12, %v2633_v40 }
 0x364   :  { %v245_v19 = vsel %vm244_vm3, %v242_v17, -inf  ;;  %v243_v20 = vadd.f32 %v241_v15, %v2621_v32 }
 0x365   :  { %246 = vmax.xlane.f32.xlu0 %v245_v19 }
 0x366   :  { %v248_v22 = vsel %vm244_vm3, %v243_v20, -inf }
 0x367   :  { %249 = vmax.xlane.f32.xlu1 %v248_v22  ;;  %v363_v23 = vpop.f32.mrb[4].mxu1 }
 0x368   :  { %v370_v24 = vmul.f32 0.35355338, %v363_v23  ;;  %v2139_v25 = vpop.f32.mrb[5].mxu1 }
 0x369   :  { %v366_v26 = vpop.f32.mrb[6].mxu1 }
 0x36a   :  { %v371_v27 = vmul.f32 0.35355338, %v366_v26  ;;  %v2140_v28 = vpop.f32.mrb[7].mxu1  ;;  %v372_v31 = vadd.f32 %v370_v24, %v2633_v40 }
 0x36c   :  { %v374_v33 = vsel %vm244_vm3, %v372_v31, -inf  ;;  %v373_v34 = vadd.f32 %v371_v27, %v2621_v32 }
 0x36d   :  { %375 = vmax.xlane.f32.xlu0 %v374_v33 }
 0x36e   :  { %v377_v39 = vsel %vm244_vm3, %v373_v34, -inf }
 0x36f   :  { %v499_v35 = vpop.f32.mrb[8].mxu1 }
 0x370   :  { %v506_v37 = vmul.f32 0.35355338, %v499_v35  ;;  %v2151_v38 = vpop.f32.mrb[9].mxu1 }
 0x371   :  { %378 = vmax.xlane.f32.xlu0 %v377_v39  ;;  %v502_v41 = vpop.f32.mrb[10].mxu1 }
 0x372   :  { %v507_v43 = vmul.f32 0.35355338, %v502_v41  ;;  %v2152_v44 = vpop.f32.mrb[11].mxu1  ;;  %v508_v45 = vadd.f32 %v506_v37, %v2633_v40 }
 0x374   :  { %v510_v46 = vsel %vm244_vm3, %v508_v45, -inf  ;;  %v509_v47 = vadd.f32 %v507_v43, %v2621_v32 }
 0x375   :  { %511 = vmax.xlane.f32.xlu1 %v510_v46 }
 0x376   :  { %v513_v48 = vsel %vm244_vm3, %v509_v47, -inf }
 0x377   :  { %514 = vmax.xlane.f32.xlu0 %v513_v48  ;;  %v635_v49 = vpop.f32.mrb[12].mxu1 }
 0x378   :  { %v642_v52 = vmul.f32 0.35355338, %v635_v49  ;;  %v2163_v53 = vpop.f32.mrb[13].mxu1 }
 0x379   :  { %v638_v54 = vpop.f32.mrb[14].mxu1 }
 0x37a   :  { %v643_v55 = vmul.f32 0.35355338, %v638_v54  ;;  %v2164_v56 = vpop.f32.mrb[15].mxu1  ;;  %v644_v57 = vadd.f32 %v642_v52, %v2633_v40 }
 0x37c   :  { %v646_v58 = vsel %vm244_vm3, %v644_v57, -inf  ;;  %v645_v59 = vadd.f32 %v643_v55, %v2621_v32 }
 0x37d   :  { %647 = vmax.xlane.f32.xlu1 %v646_v58 }
 0x37e   :  { %v649_v60 = vsel %vm244_vm3, %v645_v59, -inf }
 0x37f   :  { %650 = vmax.xlane.f32.xlu0 %v649_v60 }
 0x38e   :  { %269 = vrot.lane.b32.xlu1 %v2624_v36, %s2512_s1 }
 0x3f2   :  { %v247_v61 = vpop.xlane.xlu0 %246 }
 0x3f3   :  { %v251_v62 = vsub.f32 %v242_v17, %v247_v61 }
 0x3f4   :  { %v250_v63 = vpop.xlane.xlu1 %249 }
 0x3f5   :  { %v253_v2 = vmul.f32 1.442695, %v251_v62  ;;  %v252_v3 = vsub.f32 %v243_v20, %v250_v63 }
 0x3f7   :  { %2337 = vpow2.f32 %v253_v2  ;;  %v255_v4 = vmul.f32 1.442695, %v252_v3 }
 0x3f9   :  { %2339 = vpow2.f32 %v255_v4 }
 0x3fa   :  { %v376_v5 = vpop.xlane.xlu0 %375 }
 0x3fb   :  { %v380_v7 = vsub.f32 %v372_v31, %v376_v5 }
 0x3fd   :  { %v382_v10 = vmul.f32 1.442695, %v380_v7 }
 0x3fe   :  { %v379_v11 = vpop.xlane.xlu0 %378 }
 0x3ff   :  { %2341 = vpow2.f32 %v382_v10  ;;  %v381_v12 = vsub.f32 %v373_v34, %v379_v11 }
 0x401   :  { %v2338_v13 = vpop.eup %2337  ;;  %v384_v14 = vmul.f32 1.442695, %v381_v12 }
 0x402   :  { %v512_v15 = vpop.xlane.xlu1 %511  ;;  %v257_v16 = vsel %vm244_vm3, %v2338_v13, 0.0 }
 0x403   :  { %v2340_v19 = vpop.eup %2339  ;;  %2343 = vpow2.f32 %v384_v14  ;;  %v516_v17 = vsub.f32 %v508_v45, %v512_v15  ;;  %258 = vadd.xlane.f32.xlu1 %v257_v16 }
 0x404   :  { %v515_v22 = vpop.xlane.xlu0 %514  ;;  %v260_v20 = vsel %vm244_vm3, %v2340_v19, 0.0 }
 0x405   :  { %v518_v23 = vmul.f32 1.442695, %v516_v17  ;;  %v517_v24 = vsub.f32 %v509_v47, %v515_v22  ;;  %261 = vadd.xlane.f32.xlu0 %v260_v20 }
 0x407   :  { %2345 = vpow2.f32 %v518_v23  ;;  %v520_v25 = vmul.f32 1.442695, %v517_v24 }
 0x409   :  { %v2342_v26 = vpop.eup %2341  ;;  %2347 = vpow2.f32 %v520_v25 }
 0x40a   :  { %v648_v27 = vpop.xlane.xlu1 %647  ;;  %v386_v28 = vsel %vm244_vm3, %v2342_v26, 0.0 }
 0x40b   :  { %v652_v31 = vsub.f32 %v644_v57, %v648_v27  ;;  %387 = vadd.xlane.f32.xlu1 %v386_v28 }
 0x40c   :  { %v651_v33 = vpop.xlane.xlu0 %650 }
 0x40d   :  { %v2344_v34 = vpop.eup %2343  ;;  %v654_v35 = vmul.f32 1.442695, %v652_v31  ;;  %v653_v37 = vsub.f32 %v645_v59, %v651_v33 }
 0x40e   :  { %v270_v38 = vpop.permute.xlu1 %269  ;;  %v389_v39 = vsel %vm244_vm3, %v2344_v34, 0.0 }
 0x40f   :  { %2349 = vpow2.f32 %v654_v35  ;;  %v656_v41 = vmul.f32 1.442695, %v653_v37  ;;  %2130 = vmatpush3.bf16.msra.mxu0 %v270_v38  ;;  %390 = vadd.xlane.f32.xlu0 %v389_v39 }
 0x410   :  { %2141 = vmatprep.subr.bf16.mxu0 %v2515_v42 }
 0x411   :  { %v2346_v43 = vpop.eup %2345  ;;  %2351 = vpow2.f32 %v656_v41 }
 0x412   :  { %v522_v44 = vsel %vm244_vm3, %v2346_v43, 0.0 }
 0x413   :  { %v2348_v45 = vpop.eup %2347  ;;  %523 = vadd.xlane.f32.xlu1 %v522_v44 }
 0x414   :  { %v525_v46 = vsel %vm244_vm3, %v2348_v45, 0.0 }
 0x415   :  { %526 = vadd.xlane.f32.xlu0 %v525_v46 }
 0x419   :  { %v2350_v47 = vpop.eup %2349 }
 0x41a   :  { %v658_v48 = vsel %vm244_vm3, %v2350_v47, 0.0 }
 0x41b   :  { %v2352_v49 = vpop.eup %2351  ;;  %659 = vadd.xlane.f32.xlu1 %v658_v48  ;;  %v2313_v48 = vld [vmem:[#allocation3 + $0x8] ss:$12 sps:$4 sm:$0xff]  }
 0x41c   :  { %v661_v52 = vsel %vm244_vm3, %v2352_v49, 0.0 }
 0x41d   :  { %662 = vadd.xlane.f32.xlu0 %v661_v52 }
 0x42c   :  { %533 = vrot.lane.b32.xlu1 %v2624_v36, %s2523_s21 }
 0x430   :  { %669 = vrot.lane.b32.xlu1 %v2624_v36, %s2524_s22 }
 0x433   :  { %397 = vrot.lane.b32.xlu0 %v2624_v36, %s2525_s23 }
 0x490   :  { %v259_v53 = vpop.xlane.xlu1 %258 }
 0x491   :  { %2353 = vrcp.f32 %v259_v53 }
 0x492   :  { %v262_v54 = vpop.xlane.xlu0 %261 }
 0x493   :  { %2355 = vrcp.f32 %v262_v54 }
 0x498   :  { %v388_v60 = vpop.xlane.xlu1 %387 }
 0x49b   :  { %v2354_v55 = vpop.eup %2353 }
 0x49c   :  { %v391_v56 = vpop.xlane.xlu0 %390  ;;  %v264_v58 = vmul.f32 %v2354_v55, %v2338_v13 }
 0x49d   :  { %v2356_v57 = vpop.eup %2355  ;;  %2357 = vrcp.f32 %v391_v56 }
 0x49e   :  { %v266_v59 = vmul.f32 %v2356_v57, %v2340_v19  ;;  %2359 = vrcp.f32 %v388_v60 }
 0x4a0   :  { %v267_v61 = vpack.c.bf16 %v266_v59, %v264_v58  ;;  %v524_v36 = vpop.xlane.xlu1 %523 }
 0x4a2   :  { %2132 = vmatmul.mubr.msk.bf16.vlgmr.msra.gmra.mrb[4].mxu0 %vm244_vm3, %v267_v61  ;;  %v527_v62 = vpop.xlane.xlu0 %526 }
 0x4a3   :  { %2143 = vmatprep.mubr.msk.bf16.mxu0 %vm2516_vm1, %v2515_v42  ;;  %2361 = vrcp.f32 %v527_v62 }
 0x4a4   :  { %2363 = vrcp.f32 %v524_v36 }
 0x4a7   :  { %v2358_v63 = vpop.eup %2357 }
 0x4a8   :  { %v2360_v3 = vpop.eup %2359  ;;  %v395_v4 = vmul.f32 %v2358_v63, %v2344_v34  ;;  %v660_v5 = vpop.xlane.xlu1 %659 }
 0x4a9   :  { %v393_v7 = vmul.f32 %v2360_v3, %v2342_v26 }
 0x4aa   :  { %v663_v2 = vpop.xlane.xlu0 %662 }
 0x4ab   :  { %2365 = vrcp.f32 %v663_v2  ;;  %v396_v11 = vpack.c.bf16 %v395_v4, %v393_v7 }
 0x4ac   :  { %2367 = vrcp.f32 %v660_v5  ;;  %v534_v13 = vpop.permute.xlu1 %533 }
 0x4ad   :  { %v2362_v12 = vpop.eup %2361 }
 0x4ae   :  { %v398_v10 = vpop.permute.xlu0 %397  ;;  %v2364_v14 = vpop.eup %2363  ;;  %v531_v15 = vmul.f32 %v2362_v12, %v2348_v45 }
 0x4af   :  { %2142 = vmatpush3.bf16.msra.mxu0 %v398_v10  ;;  %v529_v16 = vmul.f32 %v2364_v14, %v2346_v43 }
 0x4b0   :  { %2153 = vmatprep.subr.bf16.mxu0 %v2515_v42  ;;  %v670_v22 = vpop.permute.xlu1 %669 }
 0x4b1   :  { %v532_v19 = vpack.c.bf16 %v531_v15, %v529_v16 }
 0x4b2   :  { %2144 = vmatmul.mubr.msk.bf16.vlgmr.msra.gmra.mrb[8].mxu0 %vm244_vm3, %v396_v11 }
 0x4b3   :  { %2154 = vmatpush3.bf16.msra.mxu0 %v534_v13  ;;  %2155 = vmatprep.mubr.msk.bf16.mxu0 %vm2516_vm1, %v2515_v42 }
 0x4b4   :  { %2165 = vmatprep.subr.bf16.mxu0 %v2515_v42 }
 0x4b5   :  { %v2366_v17 = vpop.eup %2365 }
 0x4b6   :  { %v2368_v20 = vpop.eup %2367  ;;  %v667_v23 = vmul.f32 %v2366_v17, %v2352_v49 }
 0x4b7   :  { %v665_v24 = vmul.f32 %v2368_v20, %v2350_v47 }
 0x4b9   :  { %v668_v25 = vpack.c.bf16 %v667_v23, %v665_v24  ;;  %v800_v24 = vsub.s32 1, %v2605_v18 }
 0x4ba   :  { %2156 = vmatmul.mubr.msk.bf16.vlgmr.msra.gmra.mrb[12].mxu0 %vm244_vm3, %v532_v19 }
 0x4bb   :  { %2166 = vmatpush3.bf16.msra.mxu0 %v670_v22  ;;  %2167 = vmatprep.mubr.msk.bf16.mxu0 %vm2516_vm1, %v2515_v42 }
 0x4bc   :  { %2179 = vmatprep.subr.bf16.mxu0 %v2515_v42 }
 0x4c2   :  { %2168 = vmatmul.mubr.msk.bf16.vlgmr.msra.gmra.mrb[16].mxu0 %vm244_vm3, %v668_v25 }
 0x4c3   :  { %2183 = vmatprep.mubr.msk.bf16.mxu0 %vm2516_vm1, %v2515_v42 }
 0x575   :  { %v309_v26 = vpop.f32.mrb[4].mxu0 }
 0x576   :  { %316 = vst.msk [vmem:[#allocation2] sm:$0xff] %vm192_vm2, %v309_v26  ;;  %v2133_v27 = vpop.f32.mrb[5].mxu0 }
 0x577   :  { %v312_v28 = vpop.f32.mrb[6].mxu0 }
 0x578   :  { %317 = vst.msk [vmem:[#allocation2 + $0x8] sm:$0xff] %vm192_vm2, %v312_v28  ;;  %v2134_v31 = vpop.f32.mrb[7].mxu0 }
 0x585   :  { %v437_v33 = vpop.f32.mrb[8].mxu0 }
 0x586   :  { %446 = vrot.lane.b32.xlu0 %v437_v33, %s2526_s24  ;;  %v2145_v34 = vpop.f32.mrb[9].mxu0 }
 0x587   :  { %v440_v35 = vpop.f32.mrb[10].mxu0 }
 0x588   :  { %448 = vrot.lane.b32.xlu1 %v440_v35, %s2526_s24  ;;  %v2146_v37 = vpop.f32.mrb[11].mxu0  ;;  %v2315_v35 = vld [vmem:[%s3039_s2] sm:$0xff]  }
 0x589   :  { %v2316_v37 = vld [vmem:[%s3039_s2 + $0x8] sm:$0xff]  }
 0x58d   :  { %v573_v38 = vpop.f32.mrb[12].mxu0 }
 0x58e   :  { %582 = vrot.lane.b32.xlu0 %v573_v38, %s2527_s25  ;;  %v2157_v39 = vpop.f32.mrb[13].mxu0  ;;  %v2317_v38 = vld [vmem:[%s3039_s2 + $0x10] sm:$0xff]  }
 0x58f   :  { %v576_v41 = vpop.f32.mrb[14].mxu0 }
 0x590   :  { %584 = vrot.lane.b32.xlu1 %v576_v41, %s2527_s25  ;;  %v2158_v43 = vpop.f32.mrb[15].mxu0 }
 0x595   :  { %v709_v44 = vpop.f32.mrb[16].mxu0 }
 0x596   :  { %718 = vrot.lane.b32.xlu0 %v709_v44, %s2528_s26  ;;  %v2169_v45 = vpop.f32.mrb[17].mxu0 }
 0x597   :  { %v712_v46 = vpop.f32.mrb[18].mxu0 }
 0x598   :  { %720 = vrot.lane.b32.xlu1 %v712_v46, %s2528_s26  ;;  %v2170_v47 = vpop.f32.mrb[19].mxu0 }
 0x59a   :  { %730 = vrot.lane.b32.xlu0 %v2590_v6, %s2514_s14 }
 0x59c   :  { %732 = vrot.lane.b32.xlu1 %v2592_v8, %s2514_s14 }
 0x59e   :  { %815 = vrot.lane.b32.xlu0 %v2590_v6, %s2512_s1 }
 0x5a0   :  { %817 = vrot.lane.b32.xlu1 %v2313_v48, %s2512_s1 }
 0x5f8   :  { %v447_v49 = vpop.permute.xlu0 %446 }
 0x5f9   :  { %453 = vst.msk [vmem:[#allocation2] sm:$0xff] %vm452_vm4, %v447_v49 }
 0x5fa   :  { %v449_v52 = vpop.permute.xlu1 %448 }
 0x5fb   :  { %454 = vst.msk [vmem:[#allocation2 + $0x8] sm:$0xff] %vm452_vm4, %v449_v52 }
 0x600   :  { %v583_v53 = vpop.permute.xlu0 %582 }
 0x601   :  { %589 = vst.msk [vmem:[#allocation2] sm:$0xff] %vm588_vm5, %v583_v53 }
 0x602   :  { %v585_v54 = vpop.permute.xlu1 %584 }
 0x603   :  { %590 = vst.msk [vmem:[#allocation2 + $0x8] sm:$0xff] %vm588_vm5, %v585_v54 }
 0x608   :  { %v719_v55 = vpop.permute.xlu0 %718 }
 0x609   :  { %725 = vst.msk [vmem:[#allocation2] sm:$0xff] %vm724_vm6, %v719_v55 }
 0x60a   :  { %v721_v6 = vpop.permute.xlu1 %720 }
 0x60b   :  { %726 = vst.msk [vmem:[#allocation2 + $0x8] sm:$0xff] %vm724_vm6, %v721_v6 }
 0x60c   :  { %v731_v56 = vpop.permute.xlu0 %730 }
 0x60d   :  { %2172 = vmatpush3.bf16.msra.mxu1 %v731_v56 }
 0x60e   :  { %2173 = vmatprep.subr.bf16.mxu1 %v2515_v42  ;;  %v733_v57 = vpop.permute.xlu1 %732 }
 0x610   :  { %v727_v58 = vld [vmem:[#allocation2] sm:$0xff]  ;;  %v816_v61 = vpop.permute.xlu0 %815 }
 0x611   :  { %2174 = vmatpush3.bf16.msra.mxu1 %v733_v57 }
 0x612   :  { %v728_v59 = vld [vmem:[#allocation2 + $0x8] sm:$0xff]  ;;  %2187 = vmatprep.subr.bf16.mxu1 %v2515_v42  ;;  %v818_v62 = vpop.permute.xlu1 %817 }
 0x613   :  { %v729_v60 = vpack.c.bf16 %v728_v59, %v727_v58  ;;  %v824_v36 = vsel %vm823_vm7, %v816_v61, %v818_v62 }
 0x614   :  { %2180 = vmatpush3.bf16.msra.mxu0 %v824_v36 }
 0x615   :  { %2176 = vmatmul.mubr.msk.bf16.vlgmr.msra.gmra.mrb[16].mxu1 %vm49_vm0, %v729_v60  ;;  %2181 = vmatprep.subr.bf16.mxu0 %v2515_v42 }
 0x616   :  { %2195 = vmatprep.mubr.msk.bf16.mxu1 %vm2516_vm1, %v2515_v42  ;;  %2188 = vmatpush3.bf16.msra.mxu1 %v2315_v35 }
 0x617   :  { %2189 = vmatprep.subr.bf16.mxu1 %v2515_v42 }
 0x61a   :  { %2190 = vmatpush3.bf16.msra.mxu1 %v2316_v37 }
 0x61b   :  { %2191 = vmatprep.subr.bf16.mxu1 %v2515_v42 }
 0x61e   :  { %2192 = vmatpush3.bf16.msra.mxu1 %v2317_v38 }
 0x61f   :  { %2193 = vmatprep.subr.bf16.mxu1 %v2515_v42 }
 0x6e8   :  { %v773_v63 = vpop.f32.mrb[16].mxu1 }
 0x6e9   :  { %v2757_v2 = vadd.f32 %v773_v63, %v2577_v0  ;;  %v2177_v3 = vpop.f32.mrb[17].mxu1  ;;  %v2314_v0 = vld [vmem:[#allocation3 + $0x20] ss:$12 sps:$4 sm:$0xff]  }
 0x6ea   :  { %v776_v4 = vpop.f32.mrb[18].mxu1 }
 0x6eb   :  { %v2760_v5 = vadd.f32 %v776_v4, %v2582_v1  ;;  %v2178_v7 = vpop.f32.mrb[19].mxu1  ;;  %v782_v10 = vmul.f32 %v2757_v2, %v2757_v2 }
 0x6ed   :  { %v784_v11 = vsel %vm49_vm0, %v782_v10, 0.0  ;;  %v783_v12 = vmul.f32 %v2760_v5, %v2760_v5 }
 0x6ee   :  { %785 = vadd.xlane.f32.xlu0 %v784_v11 }
 0x6ef   :  { %v787_v13 = vsel %vm49_vm0, %v783_v12, 0.0 }
 0x6f0   :  { %788 = vadd.xlane.f32.xlu1 %v787_v13  ;;  %v2319_v13 = vld [vmem:[#allocation3 + $0x30] ss:$12 sps:$4 sm:$0xff]  }
 0x701   :  { %821 = vrot.lane.b32.xlu1 %v2314_v0, %s2512_s1  ;;  %v2814_v0 = vld [vmem:[#allocation3 + $0x4c] ss:$12 sps:$4 sm:$0xff]  }
 0x704   :  { %819 = vrot.lane.b32.xlu0 %v2592_v8, %s2512_s1  ;;  %v801_v8 = vrot.slane %v2611_v21, %v800_v24 }
 0x77b   :  { %v786_v1 = vpop.xlane.xlu0 %785 }
 0x77c   :  { %v790_v14 = vmul.f32 0.03125, %v786_v1 }
 0x77d   :  { %v789_v15 = vpop.xlane.xlu1 %788 }
 0x77e   :  { %v792_v16 = vadd.f32 1e-06, %v790_v14  ;;  %v791_v19 = vmul.f32 0.03125, %v789_v15 }
 0x77f   :  { %v820_v17 = vpop.permute.xlu0 %819 }
 0x780   :  { %2369 = vrsqrt.f32 %v792_v16  ;;  %v793_v22 = vadd.f32 1e-06, %v791_v19 }
 0x781   :  { %v822_v20 = vpop.permute.xlu1 %821 }
 0x782   :  { %2371 = vrsqrt.f32 %v793_v22  ;;  %v825_v23 = vsel %vm823_vm7, %v820_v17, %v822_v20  ;;  %v1003_v22 = vsub.s32 2, %v2605_v18 }
 0x783   :  { %2182 = vmatpush3.bf16.msra.mxu0 %v825_v23 }
 0x784   :  { %v1004_v24 = vrot.slane %v2611_v21, %v1003_v22 }
 0x78a   :  { %v2370_v25 = vpop.eup %2369 }
 0x78b   :  { %v796_v26 = vmul.f32 %v2370_v25, %v2757_v2 }
 0x78c   :  { %v2372_v27 = vpop.eup %2371 }
 0x78d   :  { %v797_v28 = vmul.f32 %v2372_v27, %v2760_v5  ;;  %v802_v31 = vmul.f32 %v801_v8, %v796_v26 }
 0x78f   :  { %v803_v33 = vmul.f32 %v801_v8, %v797_v28 }
 0x791   :  { %v804_v34 = vpack.c.bf16 %v803_v33, %v802_v31 }
 0x793   :  { %2184 = vmatmul.mubr.msk.bf16.vlgmr.msra.gmra.mrb[20].mxu0 %vm49_vm0, %v804_v34 }
 0x794   :  { %1063 = vmatprep.mubr.bf16.mxu0 %v2511_v9  ;;  %v2318_v9 = vld [vmem:[%s3039_s2 + $0x18] sm:$0xff]  }
 0x795   :  { %2194 = vmatpush3.bf16.msra.mxu1 %v2318_v9 }
 0x796   :  { %2205 = vmatprep.subr.bf16.mxu1 %v2515_v42 }
 0x866   :  { %v865_v39 = vpop.f32.mrb[20].mxu0 }
 0x867   :  { %888 = vrot.lane.b32.xlu0 %v865_v39, %s2512_s1  ;;  %v2185_v41 = vpop.f32.mrb[21].mxu0  ;;  %v2024_v45 = vmul.f32 -1.442695, %v865_v39 }
 0x868   :  { %v868_v43 = vpop.f32.mrb[22].mxu0 }
 0x869   :  { %890 = vrot.lane.b32.xlu1 %v868_v43, %s2512_s1  ;;  %v2186_v44 = vpop.f32.mrb[23].mxu0  ;;  %v2025_v46 = vmul.f32 -1.442695, %v868_v43  ;;  %2373 = vpow2.f32 %v2024_v45 }
 0x86b   :  { %2375 = vpow2.f32 %v2025_v46 }
 0x873   :  { %v2374_v47 = vpop.eup %2373 }
 0x874   :  { %v878_v49 = vadd.f32 1.0, %v2374_v47 }
 0x875   :  { %v2376_v48 = vpop.eup %2375 }
 0x876   :  { %v879_v52 = vadd.f32 1.0, %v2376_v48  ;;  %2377 = vrcp.f32 %v878_v49 }
 0x878   :  { %2379 = vrcp.f32 %v879_v52 }
 0x880   :  { %v2378_v53 = vpop.eup %2377 }
 0x881   :  { %v884_v6 = vmul.f32 %v2378_v53, %v865_v39 }
 0x882   :  { %v2380_v54 = vpop.eup %2379 }
 0x883   :  { %v885_v56 = vmul.f32 %v2380_v54, %v868_v43 }
 0x8d9   :  { %v889_v55 = vpop.permute.xlu0 %888 }
 0x8da   :  { %v894_v58 = vmul.f32 %v889_v55, %v884_v6 }
 0x8db   :  { %v891_v57 = vpop.permute.xlu1 %890 }
 0x8dc   :  { %v895_v59 = vmul.f32 %v891_v57, %v885_v56 }
 0x8de   :  { %v896_v60 = vpack.c.bf16 %v895_v59, %v894_v58 }
 0x8e0   :  { %2196 = vmatmul.mubr.msk.bf16.vlgmr.msra.gmra.mrb[20].mxu1 %vm823_vm7, %v896_v60 }
 0x8e1   :  { %2207 = vmatprep.mubr.msk.bf16.mxu1 %vm2516_vm1, %v2515_v42 }
 0x9b3   :  { %v967_v61 = vpop.f32.mrb[20].mxu1 }
 0x9b4   :  { %v2800_v62 = vadd.f32 %v967_v61, %v2757_v2  ;;  %v2197_v36 = vpop.f32.mrb[21].mxu1  ;;  %v2811_v2 = vld [vmem:[#allocation3 + $0x34] ss:$12 sps:$4 sm:$0xff]  }
 0x9b5   :  { %v970_v63 = vpop.f32.mrb[22].mxu1  ;;  %1031 = vmatprep.subr.bf16.mxu0 %v2811_v2 }
 0x9b6   :  { %v2803_v3 = vadd.f32 %v970_v63, %v2760_v5  ;;  %v2198_v4 = vpop.f32.mrb[23].mxu1  ;;  %v985_v7 = vmul.f32 %v2800_v62, %v2800_v62  ;;  %1032 = vmatpush1.bf16.msra.mxu0 %v2319_v13  ;;  %v2322_v5 = vld [vmem:[#allocation3 + $0x48] ss:$12 sps:$4 sm:$0xff]  }
 0x9b7   :  { %1033 = vmatprep.subr.bf16.mxu0 %v2814_v0 }
 0x9b8   :  { %v987_v10 = vsel %vm49_vm0, %v985_v7, 0.0  ;;  %v986_v11 = vmul.f32 %v2803_v3, %v2803_v3 }
 0x9b9   :  { %988 = vadd.xlane.f32.xlu0 %v987_v10 }
 0x9ba   :  { %v990_v12 = vsel %vm49_vm0, %v986_v11, 0.0  ;;  %1034 = vmatpush1.bf16.msra.mxu0 %v2322_v5 }
 0x9bb   :  { %991 = vadd.xlane.f32.xlu1 %v990_v12  ;;  %2199 = vmatprep.subr.bf16.mxu0 %v2515_v42 }
 0xa46   :  { %v989_v1 = vpop.xlane.xlu0 %988 }
 0xa47   :  { %v993_v14 = vmul.f32 0.03125, %v989_v1 }
 0xa48   :  { %v992_v15 = vpop.xlane.xlu1 %991 }
 0xa49   :  { %v995_v16 = vadd.f32 1e-06, %v993_v14  ;;  %v994_v19 = vmul.f32 0.03125, %v992_v15 }
 0xa4b   :  { %2381 = vrsqrt.f32 %v995_v16  ;;  %v996_v17 = vadd.f32 1e-06, %v994_v19 }
 0xa4d   :  { %2383 = vrsqrt.f32 %v996_v17 }
 0xa55   :  { %v2382_v20 = vpop.eup %2381 }
 0xa56   :  { %v999_v23 = vmul.f32 %v2382_v20, %v2800_v62 }
 0xa57   :  { %v2384_v25 = vpop.eup %2383 }
 0xa58   :  { %v1000_v26 = vmul.f32 %v2384_v25, %v2803_v3  ;;  %v1005_v8 = vmul.f32 %v1004_v24, %v999_v23 }
 0xa5a   :  { %v1006_v27 = vmul.f32 %v1004_v24, %v1000_v26 }
 0xa5c   :  { %v1007_v28 = vpack.c.bf16 %v1006_v27, %v1005_v8 }
 0xa5e   :  { %2035 = vmatmul.mubr.msk.bf16.vlgmr.msra.gmra.mrb[24].mxu0 %vm49_vm0, %v1007_v28 }
 0xa5f   :  { %2201 = vmatprep.mubr.msk.bf16.mxu0 %vm2516_vm1, %v2515_v42 }
 0xb31   :  { %v1065_v31 = vpop.f32.mrb[24].mxu0 }
 0xb32   :  { %v1067_v33 = vpop.f32.mrb[25].mxu0  ;;  %v1076_v9 = vmul.f32 %v1065_v31, %v2633_v40  ;;  %v1074_v52 = vmul.f32 %v1065_v31, %v2647_v50 }
 0xb33   :  { %v1091_v34 = vmul.f32 %v1067_v33, %v2617_v29  ;;  %v1069_v35 = vpop.f32.mrb[26].mxu0  ;;  %v2433_v29 = vld [vmem:[%s3037_s0] sm:$0xff] }
 0xb34   :  { %v2826_v37 = vpack.c.bf16 %v1069_v35, %v1065_v31  ;;  %v1071_v38 = vpop.f32.mrb[27].mxu0  ;;  %v1077_v39 = vmul.f32 %v1069_v35, %v2621_v32  ;;  %v1089_v43 = vmul.f32 %v2433_v29, %v1065_v31  ;;  %v1075_v53 = vmul.f32 %v1069_v35, %v2651_v51 }
 0xb35   :  { %v1092_v21 = vmul.f32 %v1071_v38, %v2619_v30  ;;  %1095 = vrot.lane.b32.xlu0 %v1091_v34, %s2513_s11  ;;  %v2434_v30 = vld [vmem:[%s3037_s0 + $0x8] sm:$0xff] }
 0xb36   :  { %v1090_v44 = vmul.f32 %v2434_v30, %v1069_v35 }
 0xb37   :  { %1097 = vrot.lane.b32.xlu1 %v1092_v21, %s2513_s11 }
 0xb39   :  { %1080 = vrot.lane.b32.xlu0 %v1076_v9, %s2513_s11 }
 0xb3b   :  { %1082 = vrot.lane.b32.xlu1 %v1077_v39, %s2513_s11 }
 0xba7   :  { %v1096_v41 = vpop.permute.xlu0 %1095 }
 0xba8   :  { %v1101_v46 = vadd.f32 %v1096_v41, %v1089_v43 }
 0xba9   :  { %v1098_v45 = vpop.permute.xlu1 %1097 }
 0xbaa   :  { %v1102_v47 = vadd.f32 %v1098_v45, %v1090_v44 }
 0xbab   :  { %v1081_v48 = vpop.permute.xlu0 %1080 }
 0xbac   :  { %v1103_v49 = vpack.c.bf16 %v1102_v47, %v1101_v46  ;;  %v1086_v55 = vadd.f32 %v1081_v48, %v1074_v52 }
 0xbad   :  { %v1083_v54 = vpop.permute.xlu1 %1082 }
 0xbae   :  { %v1087_v6 = vadd.f32 %v1083_v54, %v1075_v53  ;;  %1235 = vrot.lane.b32.xlu1 %v1103_v49, %s2517_s15  ;;  %1106 = vrot.lane.b32.xlu0 %v1103_v49, %s2514_s14 }
 0xbb0   :  { %v1088_v56 = vpack.c.bf16 %v1087_v6, %v1086_v55 }
 0xbb2   :  { %1370 = vrot.lane.b32.xlu1 %v1103_v49, %s2518_s16  ;;  %1233 = vrot.lane.b32.xlu0 %v1088_v56, %s2520_s18 }
 0xbb6   :  { %1505 = vrot.lane.b32.xlu1 %v1103_v49, %s2519_s17  ;;  %1368 = vrot.lane.b32.xlu0 %v1088_v56, %s2521_s19 }
 0xbba   :  { %1503 = vrot.lane.b32.xlu0 %v1088_v56, %s2522_s20 }
 0xc20   :  { %v1107_v50 = vpop.permute.xlu0 %1106  ;;  %v1236_v57 = vpop.permute.xlu1 %1235 }
 0xc21   :  { %v1112_v51 = vsel %vm192_vm2, %v1107_v50, 0  ;;  %v1241_v58 = vsel %vm192_vm2, %v1236_v57, 0 }
 0xc22   :  { %2200 = vmatpush3.bf16.xpose.msra.mxu0 %v1112_v51 }
 0xc23   :  { %2211 = vmatprep.subr.bf16.mxu0 %v2515_v42 }
 0xc24   :  { %v1371_v59 = vpop.permute.xlu1 %1370  ;;  %v1234_v60 = vpop.permute.xlu0 %1233 }
 0xc25   :  { %v1376_v61 = vsel %vm192_vm2, %v1371_v59, 0 }
 0xc28   :  { %v1506_v36 = vpop.permute.xlu1 %1505  ;;  %v1369_v63 = vpop.permute.xlu0 %1368 }
 0xc29   :  { %2202 = vmatmul.mubr.msk.bf16.vlgmr.msra.gmra.mrb[28].mxu0 %vm192_vm2, %v1088_v56  ;;  %v1511_v4 = vsel %vm192_vm2, %v1506_v36, 0 }
 0xc2a   :  { %2212 = vmatpush3.bf16.xpose.msra.mxu0 %v1241_v58  ;;  %2213 = vmatprep.mubr.msk.bf16.mxu0 %vm2516_vm1, %v2515_v42 }
 0xc2b   :  { %2223 = vmatprep.subr.bf16.mxu0 %v2515_v42 }
 0xc2c   :  { %v1504_v7 = vpop.permute.xlu0 %1503 }
 0xc31   :  { %2214 = vmatmul.mubr.msk.bf16.vlgmr.msra.gmra.mrb[32].mxu0 %vm192_vm2, %v1234_v60 }
 0xc32   :  { %2224 = vmatpush3.bf16.xpose.msra.mxu0 %v1376_v61  ;;  %2225 = vmatprep.mubr.msk.bf16.mxu0 %vm2516_vm1, %v2515_v42 }
 0xc33   :  { %2235 = vmatprep.subr.bf16.mxu0 %v2515_v42 }
 0xc39   :  { %2226 = vmatmul.mubr.msk.bf16.vlgmr.msra.gmra.mrb[36].mxu0 %vm192_vm2, %v1369_v63 }
 0xc3a   :  { %2236 = vmatpush3.bf16.xpose.msra.mxu0 %v1511_v4  ;;  %2237 = vmatprep.mubr.msk.bf16.mxu0 %vm2516_vm1, %v2515_v42 }
 0xc3b   :  { %2247 = vmatprep.subr.bf16.mxu0 %v2515_v42 }
 0xc41   :  { %2238 = vmatmul.mubr.msk.bf16.vlgmr.msra.gmra.mrb[40].mxu0 %vm192_vm2, %v1504_v7 }
 0xc42   :  { %2251 = vmatprep.mubr.msk.bf16.mxu0 %vm2516_vm1, %v2515_v42 }
 0xcfc   :  { %v1148_v10 = vpop.f32.mrb[28].mxu0 }
 0xcfd   :  { %v1155_v11 = vmul.f32 0.35355338, %v1148_v10  ;;  %v2203_v12 = vpop.f32.mrb[29].mxu0 }
 0xcfe   :  { %v1151_v13 = vpop.f32.mrb[30].mxu0 }
 0xcff   :  { %v1156_v5 = vmul.f32 0.35355338, %v1151_v13  ;;  %v2204_v1 = vpop.f32.mrb[31].mxu0  ;;  %v1157_v14 = vadd.f32 %v1155_v11, %v2633_v40 }
 0xd01   :  { %v1159_v15 = vsel %vm244_vm3, %v1157_v14, -inf  ;;  %v1158_v16 = vadd.f32 %v1156_v5, %v2621_v32 }
 0xd02   :  { %1160 = vmax.xlane.f32.xlu1 %v1159_v15 }
 0xd03   :  { %v1162_v19 = vsel %vm244_vm3, %v1158_v16, -inf }
 0xd04   :  { %1163 = vmax.xlane.f32.xlu0 %v1162_v19  ;;  %v1277_v17 = vpop.f32.mrb[32].mxu0 }
 0xd05   :  { %v1284_v22 = vmul.f32 0.35355338, %v1277_v17  ;;  %v2215_v20 = vpop.f32.mrb[33].mxu0 }
 0xd06   :  { %v1280_v23 = vpop.f32.mrb[34].mxu0 }
 0xd07   :  { %v1285_v24 = vmul.f32 0.35355338, %v1280_v23  ;;  %v2216_v25 = vpop.f32.mrb[35].mxu0  ;;  %v1286_v26 = vadd.f32 %v1284_v22, %v2633_v40 }
 0xd09   :  { %v1288_v8 = vsel %vm244_vm3, %v1286_v26, -inf  ;;  %v1287_v27 = vadd.f32 %v1285_v24, %v2621_v32 }
 0xd0a   :  { %1289 = vmax.xlane.f32.xlu0 %v1288_v8 }
 0xd0b   :  { %v1291_v28 = vsel %vm244_vm3, %v1287_v27, -inf }
 0xd0c   :  { %1292 = vmax.xlane.f32.xlu1 %v1291_v28  ;;  %v1412_v31 = vpop.f32.mrb[36].mxu0 }
 0xd0d   :  { %v1419_v33 = vmul.f32 0.35355338, %v1412_v31  ;;  %v2227_v34 = vpop.f32.mrb[37].mxu0 }
 0xd0e   :  { %v1415_v35 = vpop.f32.mrb[38].mxu0 }
 0xd0f   :  { %v1420_v38 = vmul.f32 0.35355338, %v1415_v35  ;;  %v2228_v21 = vpop.f32.mrb[39].mxu0  ;;  %v1421_v9 = vadd.f32 %v1419_v33, %v2633_v40 }
 0xd11   :  { %v1423_v39 = vsel %vm244_vm3, %v1421_v9, -inf  ;;  %v1422_v41 = vadd.f32 %v1420_v38, %v2621_v32 }
 0xd12   :  { %1424 = vmax.xlane.f32.xlu0 %v1423_v39 }
 0xd13   :  { %v1426_v29 = vsel %vm244_vm3, %v1422_v41, -inf }
 0xd14   :  { %1427 = vmax.xlane.f32.xlu1 %v1426_v29  ;;  %v1547_v43 = vpop.f32.mrb[40].mxu0 }
 0xd15   :  { %v1554_v30 = vmul.f32 0.35355338, %v1547_v43  ;;  %v2239_v44 = vpop.f32.mrb[41].mxu0 }
 0xd16   :  { %v1550_v45 = vpop.f32.mrb[42].mxu0 }
 0xd17   :  { %v1555_v46 = vmul.f32 0.35355338, %v1550_v45  ;;  %v2240_v47 = vpop.f32.mrb[43].mxu0  ;;  %v1556_v48 = vadd.f32 %v1554_v30, %v2633_v40 }
 0xd19   :  { %v1558_v49 = vsel %vm244_vm3, %v1556_v48, -inf  ;;  %v1557_v52 = vadd.f32 %v1555_v46, %v2621_v32 }
 0xd1a   :  { %1559 = vmax.xlane.f32.xlu0 %v1558_v49 }
 0xd1b   :  { %v1561_v53 = vsel %vm244_vm3, %v1557_v52, -inf }
 0xd1c   :  { %1562 = vmax.xlane.f32.xlu1 %v1561_v53 }
 0xd8f   :  { %v1161_v54 = vpop.xlane.xlu1 %1160 }
 0xd90   :  { %v1165_v55 = vsub.f32 %v1157_v14, %v1161_v54 }
 0xd91   :  { %v1164_v6 = vpop.xlane.xlu0 %1163 }
 0xd92   :  { %v1167_v56 = vmul.f32 1.442695, %v1165_v55  ;;  %v1166_v50 = vsub.f32 %v1158_v16, %v1164_v6 }
 0xd94   :  { %2385 = vpow2.f32 %v1167_v56  ;;  %v1169_v51 = vmul.f32 1.442695, %v1166_v50 }
 0xd96   :  { %2387 = vpow2.f32 %v1169_v51 }
 0xd97   :  { %v1290_v57 = vpop.xlane.xlu0 %1289 }
 0xd98   :  { %v1294_v58 = vsub.f32 %v1286_v26, %v1290_v57 }
 0xd99   :  { %v1293_v4 = vpop.xlane.xlu1 %1292 }
 0xd9a   :  { %v1296_v59 = vmul.f32 1.442695, %v1294_v58  ;;  %v1295_v7 = vsub.f32 %v1287_v27, %v1293_v4 }
 0xd9c   :  { %2389 = vpow2.f32 %v1296_v59  ;;  %v1298_v12 = vmul.f32 1.442695, %v1295_v7 }
 0xd9e   :  { %v2386_v40 = vpop.eup %2385  ;;  %2391 = vpow2.f32 %v1298_v12 }
 0xd9f   :  { %v1171_v60 = vsel %vm244_vm3, %v2386_v40, 0.0  ;;  %v1425_v11 = vpop.xlane.xlu0 %1424 }
 0xda0   :  { %v2388_v32 = vpop.eup %2387  ;;  %1172 = vadd.xlane.f32.xlu0 %v1171_v60  ;;  %v1429_v1 = vsub.f32 %v1421_v9, %v1425_v11 }
 0xda1   :  { %v1174_v61 = vsel %vm244_vm3, %v2388_v32, 0.0  ;;  %v1428_v10 = vpop.xlane.xlu1 %1427 }
 0xda2   :  { %1175 = vadd.xlane.f32.xlu1 %v1174_v61  ;;  %v1430_v13 = vsub.f32 %v1422_v41, %v1428_v10  ;;  %v1431_v19 = vmul.f32 1.442695, %v1429_v1 }
 0xda4   :  { %v1433_v15 = vmul.f32 1.442695, %v1430_v13 }
 0xda6   :  { %v2888_v36 = vpop.eup %2389  ;;  %2393 = vpow2.f32 %v1433_v15 }
 0xda7   :  { %v1300_v63 = vsel %vm244_vm3, %v2888_v36, 0.0  ;;  %v1560_v14 = vpop.xlane.xlu0 %1559  ;;  %2395 = vpow2.f32 %v1431_v19 }
 0xda8   :  { %1301 = vadd.xlane.f32.xlu0 %v1300_v63  ;;  %v1564_v17 = vsub.f32 %v1556_v48, %v1560_v14  ;;  %v2392_v23 = vpop.eup %2391 }
 0xda9   :  { %v1563_v5 = vpop.xlane.xlu1 %1562  ;;  %v1303_v24 = vsel %vm244_vm3, %v2392_v23, 0.0 }
 0xdaa   :  { %v1565_v16 = vsub.f32 %v1557_v52, %v1563_v5  ;;  %v1566_v20 = vmul.f32 1.442695, %v1564_v17 }
 0xdac   :  { %v1568_v22 = vmul.f32 1.442695, %v1565_v16 }
 0xdae   :  { %2397 = vpow2.f32 %v1568_v22 }
 0xdaf   :  { %2399 = vpow2.f32 %v1566_v20 }
 0xdb0   :  { %v2394_v25 = vpop.eup %2393 }
 0xdb1   :  { %v2396_v26 = vpop.eup %2395  ;;  %v1438_v8 = vsel %vm244_vm3, %v2394_v25, 0.0 }
 0xdb2   :  { %v1435_v28 = vsel %vm244_vm3, %v2396_v26, 0.0 }
 0xdb3   :  { %1311 = vrot.lane.b32.xlu1 %v2826_v37, %s2525_s23 }
 0xdb8   :  { %v2898_v27 = vpop.eup %2397 }
 0xdb9   :  { %v2400_v31 = vpop.eup %2399  ;;  %v1573_v33 = vsel %vm244_vm3, %v2898_v27, 0.0 }
 0xdba   :  { %v1570_v34 = vsel %vm244_vm3, %v2400_v31, 0.0 }
 0xdbe   :  { %1183 = vrot.lane.b32.xlu0 %v2826_v37, %s2512_s1 }
 0xdd7   :  { %1304 = vadd.xlane.f32.xlu1 %v1303_v24 }
 0xddb   :  { %1439 = vadd.xlane.f32.xlu1 %v1438_v8 }
 0xddd   :  { %1436 = vadd.xlane.f32.xlu0 %v1435_v28 }
 0xddf   :  { %1574 = vadd.xlane.f32.xlu1 %v1573_v33 }
 0xde1   :  { %1571 = vadd.xlane.f32.xlu0 %v1570_v34 }
 0xdf0   :  { %1446 = vrot.lane.b32.xlu1 %v2826_v37, %s2523_s21 }
 0xdf7   :  { %1581 = vrot.lane.b32.xlu0 %v2826_v37, %s2524_s22 }
 0xe2d   :  { %v1173_v35 = vpop.xlane.xlu0 %1172 }
 0xe2e   :  { %2401 = vrcp.f32 %v1173_v35 }
 0xe2f   :  { %v1176_v38 = vpop.xlane.xlu1 %1175 }
 0xe30   :  { %2403 = vrcp.f32 %v1176_v38 }
 0xe33   :  { %v1312_v44 = vpop.permute.xlu1 %1311 }
 0xe35   :  { %v1302_v21 = vpop.xlane.xlu0 %1301 }
 0xe36   :  { %2405 = vrcp.f32 %v1302_v21 }
 0xe38   :  { %v2402_v9 = vpop.eup %2401 }
 0xe39   :  { %v1184_v39 = vpop.permute.xlu0 %1183  ;;  %v1178_v29 = vmul.f32 %v2402_v9, %v2386_v40 }
 0xe3a   :  { %v2404_v41 = vpop.eup %2403  ;;  %2206 = vmatpush3.bf16.msra.mxu1 %v1184_v39 }
 0xe3b   :  { %v1180_v43 = vmul.f32 %v2404_v41, %v2388_v32  ;;  %2217 = vmatprep.subr.bf16.mxu1 %v2515_v42 }
 0xe3d   :  { %v1181_v30 = vpack.c.bf16 %v1180_v43, %v1178_v29 }
 0xe3f   :  { %2208 = vmatmul.mubr.msk.bf16.vlgmr.msra.gmra.mrb[24].mxu1 %vm244_vm3, %v1181_v30 }
 0xe40   :  { %2218 = vmatpush3.bf16.msra.mxu1 %v1312_v44  ;;  %2219 = vmatprep.mubr.msk.bf16.mxu1 %vm2516_vm1, %v2515_v42  ;;  %v2406_v47 = vpop.eup %2405 }
 0xe41   :  { %2229 = vmatprep.subr.bf16.mxu1 %v2515_v42  ;;  %v1307_v53 = vmul.f32 %v2406_v47, %v2888_v36 }
 0xe64   :  { %v1305_v37 = vpop.xlane.xlu1 %1304 }
 0xe65   :  { %2407 = vrcp.f32 %v1305_v37 }
 0xe68   :  { %v1440_v45 = vpop.xlane.xlu1 %1439 }
 0xe69   :  { %2409 = vrcp.f32 %v1440_v45 }
 0xe6a   :  { %v1437_v46 = vpop.xlane.xlu0 %1436 }
 0xe6b   :  { %2411 = vrcp.f32 %v1437_v46 }
 0xe6c   :  { %v1575_v48 = vpop.xlane.xlu1 %1574 }
 0xe6e   :  { %v1572_v49 = vpop.xlane.xlu0 %1571 }
 0xe6f   :  { %v2408_v52 = vpop.eup %2407  ;;  %2413 = vrcp.f32 %v1572_v49 }
 0xe70   :  { %v1309_v54 = vmul.f32 %v2408_v52, %v2392_v23  ;;  %2415 = vrcp.f32 %v1575_v48  ;;  %v1447_v56 = vpop.permute.xlu1 %1446  ;;  %v2325_v23 = vld [vmem:[#allocation3 + $0x38] ss:$12 sps:$4 sm:$0xff]  }
 0xe72   :  { %v1310_v55 = vpack.c.bf16 %v1309_v54, %v1307_v53  ;;  %v1582_v40 = vpop.permute.xlu0 %1581 }
 0xe73   :  { %v2410_v6 = vpop.eup %2409 }
 0xe74   :  { %2220 = vmatmul.mubr.msk.bf16.vlgmr.msra.gmra.mrb[28].mxu1 %vm244_vm3, %v1310_v55  ;;  %v1444_v57 = vmul.f32 %v2410_v6, %v2394_v25 }
 0xe75   :  { %v2412_v50 = vpop.eup %2411  ;;  %2230 = vmatpush3.bf16.msra.mxu1 %v1447_v56  ;;  %2231 = vmatprep.mubr.msk.bf16.mxu1 %vm2516_vm1, %v2515_v42 }
 0xe76   :  { %v1442_v51 = vmul.f32 %v2412_v50, %v2396_v26  ;;  %2241 = vmatprep.subr.bf16.mxu1 %v2515_v42 }
 0xe78   :  { %v1445_v58 = vpack.c.bf16 %v1444_v57, %v1442_v51  ;;  %v2976_v57 = vld [vmem:[%s3040_s3] sm:$0x1f] }
 0xe79   :  { %v2414_v59 = vpop.eup %2413 }
 0xe7a   :  { %v2416_v60 = vpop.eup %2415  ;;  %v1577_v32 = vmul.f32 %v2414_v59, %v2400_v31 }
 0xe7b   :  { %v1579_v61 = vmul.f32 %v2416_v60, %v2898_v27 }
 0xe7c   :  { %2232 = vmatmul.mubr.msk.bf16.vlgmr.msra.gmra.mrb[32].mxu1 %vm244_vm3, %v1445_v58 }
 0xe7d   :  { %2242 = vmatpush3.bf16.msra.mxu1 %v1582_v40  ;;  %2243 = vmatprep.mubr.msk.bf16.mxu1 %vm2516_vm1, %v2515_v42  ;;  %v1580_v36 = vpack.c.bf16 %v1579_v61, %v1577_v32 }
 0xe7e   :  { %2255 = vmatprep.subr.bf16.mxu1 %v2515_v42 }
 0xe84   :  { %2244 = vmatmul.mubr.msk.bf16.vlgmr.msra.gmra.mrb[36].mxu1 %vm244_vm3, %v1580_v36  ;;  %v2327_v36 = vld [vmem:[%s3039_s2 + $0x20] sm:$0xff]  }
 0xe85   :  { %2259 = vmatprep.mubr.msk.bf16.mxu1 %vm2516_vm1, %v2515_v42 }
 0xf12   :  { %v1223_v63 = vpop.f32.mrb[24].mxu1 }
 0xf13   :  { %1230 = vst.msk [vmem:[#allocation2] sm:$0xff] %vm192_vm2, %v1223_v63  ;;  %v2209_v4 = vpop.f32.mrb[25].mxu1  ;;  %v2328_v63 = vld [vmem:[%s3039_s2 + $0x28] sm:$0xff]  }
 0xf14   :  { %v1226_v7 = vpop.f32.mrb[26].mxu1  ;;  %v2329_v4 = vld [vmem:[%s3039_s2 + $0x30] sm:$0xff]  }
 0xf15   :  { %1231 = vst.msk [vmem:[#allocation2 + $0x8] sm:$0xff] %vm192_vm2, %v1226_v7  ;;  %v2210_v10 = vpop.f32.mrb[27].mxu1  ;;  %v2330_v7 = vld [vmem:[%s3039_s2 + $0x38] sm:$0xff]   ;;  %s2529_s2 = smov [#allocation6]  }
 0xf47   :  { %v1351_v11 = vpop.f32.mrb[28].mxu1 }
 0xf48   :  { %1360 = vrot.lane.b32.xlu1 %v1351_v11, %s2526_s24  ;;  %v2221_v12 = vpop.f32.mrb[29].mxu1 }
 0xf49   :  { %v1354_v13 = vpop.f32.mrb[30].mxu1 }
 0xf4a   :  { %1362 = vrot.lane.b32.xlu0 %v1354_v13, %s2526_s24  ;;  %v2222_v5 = vpop.f32.mrb[31].mxu1 }
 0xf4f   :  { %v1486_v1 = vpop.f32.mrb[32].mxu1 }
 0xf50   :  { %1495 = vrot.lane.b32.xlu1 %v1486_v1, %s2527_s25  ;;  %v2233_v14 = vpop.f32.mrb[33].mxu1 }
 0xf51   :  { %v1489_v15 = vpop.f32.mrb[34].mxu1 }
 0xf52   :  { %1497 = vrot.lane.b32.xlu0 %v1489_v15, %s2527_s25  ;;  %v2234_v16 = vpop.f32.mrb[35].mxu1 }
 0xf57   :  { %v1621_v19 = vpop.f32.mrb[36].mxu1 }
 0xf58   :  { %1630 = vrot.lane.b32.xlu1 %v1621_v19, %s2528_s26  ;;  %v2245_v17 = vpop.f32.mrb[37].mxu1 }
 0xf59   :  { %v1624_v22 = vpop.f32.mrb[38].mxu1 }
 0xf5a   :  { %1632 = vrot.lane.b32.xlu0 %v1624_v22, %s2528_s26  ;;  %v2246_v20 = vpop.f32.mrb[39].mxu1 }
 0xf5c   :  { %1641 = vrot.lane.b32.xlu1 %v2811_v2, %s2514_s14 }
 0xf5e   :  { %1643 = vrot.lane.b32.xlu0 %v2814_v0, %s2514_s14 }
 0xf60   :  { %1728 = vrot.lane.b32.xlu1 %v2325_v23, %s2512_s1 }
 0xf62   :  { %1726 = vrot.lane.b32.xlu0 %v2811_v2, %s2512_s1 }
 0xfba   :  { %v1361_v24 = vpop.permute.xlu1 %1360 }
 0xfbb   :  { %1366 = vst.msk [vmem:[#allocation2] sm:$0xff] %vm452_vm4, %v1361_v24 }
 0xfbc   :  { %v1363_v25 = vpop.permute.xlu0 %1362 }
 0xfbd   :  { %1367 = vst.msk [vmem:[#allocation2 + $0x8] sm:$0xff] %vm452_vm4, %v1363_v25 }
 0xfc2   :  { %v1496_v26 = vpop.permute.xlu1 %1495 }
 0xfc3   :  { %1501 = vst.msk [vmem:[#allocation2] sm:$0xff] %vm588_vm5, %v1496_v26 }
 0xfc4   :  { %v1498_v8 = vpop.permute.xlu0 %1497 }
 0xfc5   :  { %1502 = vst.msk [vmem:[#allocation2 + $0x8] sm:$0xff] %vm588_vm5, %v1498_v8 }
 0xfca   :  { %v1631_v27 = vpop.permute.xlu1 %1630 }
 0xfcb   :  { %1636 = vst.msk [vmem:[#allocation2] sm:$0xff] %vm724_vm6, %v1631_v27 }
 0xfcc   :  { %v1633_v28 = vpop.permute.xlu0 %1632 }
 0xfcd   :  { %1637 = vst.msk [vmem:[#allocation2 + $0x8] sm:$0xff] %vm724_vm6, %v1633_v28 }
 0xfce   :  { %v1642_v31 = vpop.permute.xlu1 %1641 }
 0xfcf   :  { %2248 = vmatpush3.bf16.msra.mxu0 %v1642_v31 }
 0xfd0   :  { %v1644_v2 = vpop.permute.xlu0 %1643  ;;  %2249 = vmatprep.subr.bf16.mxu0 %v2515_v42 }
 0xfd2   :  { %v1638_v33 = vld [vmem:[#allocation2] sm:$0xff]  ;;  %v1729_v21 = vpop.permute.xlu1 %1728 }
 0xfd3   :  { %2250 = vmatpush3.bf16.msra.mxu0 %v1644_v2 }
 0xfd4   :  { %v1639_v34 = vld [vmem:[#allocation2 + $0x8] sm:$0xff]  ;;  %2263 = vmatprep.subr.bf16.mxu0 %v2515_v42  ;;  %v1727_v38 = vpop.permute.xlu0 %1726 }
 0xfd5   :  { %v1640_v35 = vpack.c.bf16 %v1639_v34, %v1638_v33  ;;  %v1734_v9 = vsel %vm823_vm7, %v1727_v38, %v1729_v21 }
 0xfd6   :  { %2256 = vmatpush3.bf16.msra.mxu1 %v1734_v9 }
 0xfd7   :  { %2252 = vmatmul.mubr.msk.bf16.vlgmr.msra.gmra.mrb[44].mxu0 %vm49_vm0, %v1640_v35  ;;  %2257 = vmatprep.subr.bf16.mxu1 %v2515_v42 }
 0xfd8   :  { %2271 = vmatprep.mubr.msk.bf16.mxu0 %vm2516_vm1, %v2515_v42  ;;  %2264 = vmatpush3.bf16.msra.mxu0 %v2327_v36 }
 0xfd9   :  { %2265 = vmatprep.subr.bf16.mxu0 %v2515_v42 }
 0xfdc   :  { %2266 = vmatpush3.bf16.msra.mxu0 %v2328_v63 }
 0xfdd   :  { %2267 = vmatprep.subr.bf16.mxu0 %v2515_v42 }
 0xfe0   :  { %2268 = vmatpush3.bf16.msra.mxu0 %v2329_v4 }
 0xfe1   :  { %2269 = vmatprep.subr.bf16.mxu0 %v2515_v42 }
 0xfe4   :  { %2270 = vmatpush3.bf16.msra.mxu0 %v2330_v7 }
0x10aa   :  { %v1684_v39 = vpop.f32.mrb[44].mxu0 }
0x10ab   :  { %v2955_v41 = vadd.f32 %v1684_v39, %v2800_v62  ;;  %v2253_v29 = vpop.f32.mrb[45].mxu0  ;;  %v2326_v62 = vld [vmem:[#allocation3 + $0x50] ss:$12 sps:$4 sm:$0xff]  }
0x10ac   :  { %v1687_v43 = vpop.f32.mrb[46].mxu0  ;;  %v2331_v29 = vld [vmem:[#allocation3 + $0x60] ss:$12 sps:$4 sm:$0xff]  }
0x10ad   :  { %v2958_v30 = vadd.f32 %v1687_v43, %v2803_v3  ;;  %v2254_v44 = vpop.f32.mrb[47].mxu0  ;;  %v1693_v37 = vmul.f32 %v2955_v41, %v2955_v41  ;;  %v2332_v43 = vld [vmem:[#allocation3 + $0x78] ss:$12 sps:$4 sm:$0xff]  }
0x10af   :  { %v1695_v45 = vsel %vm49_vm0, %v1693_v37, 0.0  ;;  %v1694_v46 = vmul.f32 %v2958_v30, %v2958_v30 }
0x10b0   :  { %1696 = vadd.xlane.f32.xlu1 %v1695_v45 }
0x10b1   :  { %v1698_v47 = vsel %vm49_vm0, %v1694_v46, 0.0 }
0x10b2   :  { %1699 = vadd.xlane.f32.xlu0 %v1698_v47  ;;  %v1904_v47 = vsub.s32 4, %v2605_v18 }
0x10c1   :  { %1730 = vrot.lane.b32.xlu1 %v2814_v0, %s2512_s1  ;;  %v1711_v0 = vsub.s32 3, %v2605_v18 }
0x10c3   :  { %v1712_v58 = vrot.slane %v2976_v57, %v1711_v0 }
0x10c8   :  { %1732 = vrot.lane.b32.xlu0 %v2326_v62, %s2512_s1  ;;  %v1905_v62 = vrot.slane %v2976_v57, %v1904_v47 }
0x113d   :  { %v1697_v3 = vpop.xlane.xlu1 %1696 }
0x113e   :  { %v1701_v48 = vmul.f32 0.03125, %v1697_v3 }
0x113f   :  { %v1700_v49 = vpop.xlane.xlu0 %1699 }
0x1140   :  { %v1703_v52 = vadd.f32 1e-06, %v1701_v48  ;;  %v1702_v53 = vmul.f32 0.03125, %v1700_v49 }
0x1141   :  { %v1731_v54 = vpop.permute.xlu1 %1730 }
0x1142   :  { %2417 = vrsqrt.f32 %v1703_v52  ;;  %v1704_v55 = vadd.f32 1e-06, %v1702_v53 }
0x1143   :  { %v1733_v6 = vpop.permute.xlu0 %1732 }
0x1144   :  { %2419 = vrsqrt.f32 %v1704_v55  ;;  %v1735_v56 = vsel %vm823_vm7, %v1731_v54, %v1733_v6 }
0x1145   :  { %2258 = vmatpush3.bf16.msra.mxu1 %v1735_v56 }
0x1146   :  { %2275 = vmatprep.subr.bf16.mxu1 %v2515_v42 }
0x114c   :  { %v2418_v50 = vpop.eup %2417 }
0x114d   :  { %v1707_v51 = vmul.f32 %v2418_v50, %v2955_v41 }
0x114e   :  { %v2420_v59 = vpop.eup %2419 }
0x114f   :  { %v1708_v40 = vmul.f32 %v2420_v59, %v2958_v30  ;;  %v1713_v60 = vmul.f32 %v1712_v58, %v1707_v51 }
0x1151   :  { %v1714_v32 = vmul.f32 %v1712_v58, %v1708_v40 }
0x1153   :  { %v1715_v61 = vpack.c.bf16 %v1714_v32, %v1713_v60 }
0x1155   :  { %2260 = vmatmul.mubr.msk.bf16.vlgmr.msra.gmra.mrb[40].mxu1 %vm49_vm0, %v1715_v61 }
0x1156   :  { %2279 = vmatprep.mubr.msk.bf16.mxu1 %vm2516_vm1, %v2515_v42  ;;  %2276 = vmatpush3.bf16.msra.mxu1 %v2331_v29 }
0x1157   :  { %2277 = vmatprep.subr.bf16.mxu1 %v2515_v42 }
0x115a   :  { %2278 = vmatpush3.bf16.msra.mxu1 %v2332_v43 }
0x1228   :  { %v1775_v10 = vpop.f32.mrb[40].mxu1 }
0x1229   :  { %1798 = vrot.lane.b32.xlu1 %v1775_v10, %s2512_s1  ;;  %v2261_v11 = vpop.f32.mrb[41].mxu1  ;;  %v2048_v5 = vmul.f32 -1.442695, %v1775_v10 }
0x122a   :  { %v1778_v12 = vpop.f32.mrb[42].mxu1 }
0x122b   :  { %1800 = vrot.lane.b32.xlu0 %v1778_v12, %s2512_s1  ;;  %v2262_v13 = vpop.f32.mrb[43].mxu1  ;;  %v2049_v1 = vmul.f32 -1.442695, %v1778_v12  ;;  %2421 = vpow2.f32 %v2048_v5  ;;  %s1979_s1 = sshll.u32 %s2529_s2, 4  ;;  %s1980_s1 = int_to_ptr.vmem [resolvable:$true] %s1979_s1 }
0x122c   :  { %s2458_s21 = scalar_lea.vmem %s1980_s1, 256  ;;  %p2463_p9 = scmp.lt.s32.totalorder %s1980_s1, %s1980_s1 }
0x122d   :  { %2423 = vpow2.f32 %v2049_v1  ;;  %p2459_p8 = scmp.ne.s32.totalorder %s1980_s1, %s2458_s21  ;;  %p2464_p10 = scmp.lt.s32.totalorder %s2458_s21, %s2458_s21 }
0x122f   :  { %p2465_p11 = por %p2464_p10, %p2463_p9 }
0x1231   :  { %p2466_p12 = pnand %p2465_p11, %p2459_p8 }
0x1235   :  { %v2422_v14 = vpop.eup %2421 }
0x1236   :  { %v1788_v16 = vadd.f32 1.0, %v2422_v14 }
0x1237   :  { %v2424_v15 = vpop.eup %2423 }
0x1238   :  { %v1789_v19 = vadd.f32 1.0, %v2424_v15  ;;  %2425 = vrcp.f32 %v1788_v16 }
0x123a   :  { %2427 = vrcp.f32 %v1789_v19 }
0x1242   :  { %v2426_v17 = vpop.eup %2425 }
0x1243   :  { %v1794_v23 = vmul.f32 %v2426_v17, %v1775_v10 }
0x1244   :  { %v2428_v22 = vpop.eup %2427 }
0x1245   :  { %v1795_v24 = vmul.f32 %v2428_v22, %v1778_v12 }
0x129b   :  { %v1799_v20 = vpop.permute.xlu1 %1798 }
0x129c   :  { %v1804_v26 = vmul.f32 %v1799_v20, %v1794_v23 }
0x129d   :  { %v1801_v25 = vpop.permute.xlu0 %1800 }
0x129e   :  { %v1805_v8 = vmul.f32 %v1801_v25, %v1795_v24 }
0x12a0   :  { %v1806_v27 = vpack.c.bf16 %v1805_v8, %v1804_v26 }
0x12a2   :  { %2272 = vmatmul.mubr.msk.bf16.vlgmr.msra.gmra.mrb[48].mxu0 %vm823_vm7, %v1806_v27 }
0x1375   :  { %v1877_v28 = vpop.f32.mrb[48].mxu0 }
0x1376   :  { %v1884_v31 = vadd.f32 %v1877_v28, %v2955_v41  ;;  %v2273_v2 = vpop.f32.mrb[49].mxu0 }
0x1377   :  { %v1880_v33 = vpop.f32.mrb[50].mxu0 }
0x1378   :  { %v1886_v34 = vmul.f32 %v1884_v31, %v1884_v31  ;;  %v1885_v35 = vadd.f32 %v1880_v33, %v2958_v30  ;;  %v2274_v38 = vpop.f32.mrb[51].mxu0 }
0x137a   :  { %v1887_v21 = vmul.f32 %v1885_v35, %v1885_v35  ;;  %v1888_v9 = vsel %vm49_vm0, %v1886_v34, 0.0 }
0x137b   :  { %1889 = vadd.xlane.f32.xlu1 %v1888_v9 }
0x137c   :  { %v1891_v39 = vsel %vm49_vm0, %v1887_v21, 0.0 }
0x137d   :  { %1892 = vadd.xlane.f32.xlu0 %v1891_v39 }
0x1408   :  { %v1890_v41 = vpop.xlane.xlu1 %1889 }
0x1409   :  { %v1894_v44 = vmul.f32 0.03125, %v1890_v41 }
0x140a   :  { %v1893_v37 = vpop.xlane.xlu0 %1892 }
0x140b   :  { %v1896_v45 = vadd.f32 1e-06, %v1894_v44  ;;  %v1895_v46 = vmul.f32 0.03125, %v1893_v37 }
0x140d   :  { %2429 = vrsqrt.f32 %v1896_v45  ;;  %v1897_v30 = vadd.f32 1e-06, %v1895_v46 }
0x140f   :  { %2431 = vrsqrt.f32 %v1897_v30 }
0x1417   :  { %v2430_v3 = vpop.eup %2429 }
0x1418   :  { %v1900_v48 = vmul.f32 %v2430_v3, %v1884_v31 }
0x1419   :  { %v2432_v49 = vpop.eup %2431 }
0x141a   :  { %v1906_v52 = vmul.f32 %v1905_v62, %v1900_v48  ;;  %v1901_v53 = vmul.f32 %v2432_v49, %v1885_v35 }
0x141c   :  { %1908 = vst.msk [vmem:[#allocation6] sm:$0xff] %vm49_vm0, %v1906_v52  ;;  %v1907_v42 = vmul.f32 %v1905_v62, %v1901_v53 }
0x141e   :  { %1909 = vst.msk [vmem:[#allocation6 + $0x8] sm:$0xff] %vm49_vm0, %v1907_v42  ;;  %v1910_v54 = vpack.c.bf16 %v1907_v42, %v1906_v52 }
0x1420   :  { %2280 = vmatmul.mubr.msk.bf16.vlgmr.msra.gmra.mrb[44].mxu1 %vm49_vm0, %v1910_v54 }
0x1421   :  { %2469 = shalt.err (!%p2466_p12)
}
0x1422   :  { %s2470_s25 = scalar_lea.hbm %s3041_s4, 256 }
0x1423   :  { %p2471_p13 = scmp.ne.s32.totalorder %s3041_s4, %s2470_s25  ;;  %p2474_p0 = scmp.lt.u32.totalorder %s2470_s25, %s3041_s4 }
0x1425   :  { %p2476_p1 = pnand %p2474_p0, %p2471_p13 }
0x1427   :  { %2479 = shalt.err (!%p2476_p1)
}
0x1428   :  { %s2530_s6 = smov 128   ;;  %s2531_s9 = smov [#allocation7]  }
0x1429   :  { %1985 = dma.vmem_to_hbm [thread:$0]  %s1980_s1, 256, %s3041_s4, [#allocation5], %s2530_s6, %s2530_s6, %s2526_s24  }
0x142a   :  { %s1991_s10 = sshll.u32 %s2531_s9, 4  ;;  %s1992_s10 = int_to_ptr.vmem [resolvable:$true] %s1991_s10 }
0x142b   :  { %s2480_s12 = scalar_lea.vmem %s1992_s10, 256  ;;  %p2485_p3 = scmp.lt.s32.totalorder %s1992_s10, %s1992_s10 }
0x142c   :  { %p2481_p2 = scmp.ne.s32.totalorder %s1992_s10, %s2480_s12  ;;  %p2486_p4 = scmp.lt.s32.totalorder %s2480_s12, %s2480_s12 }
0x142e   :  { %p2487_p5 = por %p2486_p4, %p2485_p3 }
0x1430   :  { %p2488_p6 = pnand %p2487_p5, %p2481_p2 }
0x14f3   :  { %v1965_v18 = vpop.f32.mrb[44].mxu1 }
0x14f4   :  { %1972 = vst [vmem:[#allocation7] sm:$0xff] %v1965_v18  ;;  %v2281_v55 = vpop.f32.mrb[45].mxu1 }
0x14f5   :  { %v1968_v6 = vpop.f32.mrb[46].mxu1 }
0x14f6   :  { %1973 = vst [vmem:[#allocation7 + $0x8] sm:$0xff] %v1968_v6  ;;  %v2282_v56 = vpop.f32.mrb[47].mxu1 }
0x14f7   :  { %2491 = shalt.err (!%p2488_p6)
}
0x14f8   :  { %s2492_s4 = scalar_lea.hbm %s3042_s5, 256 }
0x14f9   :  { %p2493_p7 = scmp.ne.s32.totalorder %s3042_s5, %s2492_s4  ;;  %p2496_p8 = scmp.lt.u32.totalorder %s2492_s4, %s3042_s5 }
0x14fb   :  { %p2498_p9 = pnand %p2496_p8, %p2493_p7 }
0x14fd   :  { %2501 = shalt.err (!%p2498_p9)
}
0x14fe   :  { %1997 = dma.vmem_to_hbm [thread:$0]  %s1992_s10, 256, %s3042_s5, [#allocation8], %s2530_s6, %s2530_s6, %s2526_s24  }
0x14ff   :  { %2504 = dma.done.wait [#allocation5], 256  }
0x1500   :  { %2505 = vsyncadd [#allocation5], 4294967040 }
0x1501   :  { %2506 = dma.done.wait [#allocation8], 256  }
0x1502   :  { %2507 = vsyncadd [#allocation8], 4294967040 }
0x1503   :  { %2004 = vsyncpa [#allocation4], 1 }
0x1504   :  { %2005 = vsyncpa [#allocation5], 1 }
0x1505   :  { %2006 = vsyncpa [#allocation8], 1 }

</bundles_post_ra>
